<compile_context>
chip_gen: v5e
topology: v5e:2x2
jax: 0.10.0
libtpu: 0.0.40
codegen_flags: <defaults>
</compile_context>

<pallas_src>
import functools

import jax
import jax.numpy as jnp
from jax.experimental import pallas as pl
from jax.experimental.pallas import tpu as pltpu

LEAKY_SLOPE = 0.01  # nn.LeakyReLU default negative_slope


def _leaky_relu(z):
    return jnp.where(z >= 0, z, LEAKY_SLOPE * z)


def _round_up(a, m):
    return ((a + m - 1) // m) * m


# ---------------------------------------------------------------------------
# Kernel
# ---------------------------------------------------------------------------
def skipconn_kernel(x_ref, win_ref, wcur0_ref, wcp_ref, wx_ref, wout_ref,
                    o_ref, buf_ref, *, num_hidden_layers, hidden_size,
                    use_vpu_xproj):
    H = hidden_size
    L = num_hidden_layers
    mdt = buf_ref.dtype  # matmul operand dtype (f32 or bf16)

    xT = x_ref[...]                                   # (I+1, TILE_B), mdt

    # ---- hoisted x-projection for every hidden layer + output layer --------
    # The trailing ones row of xT and trailing bias column of wx fold every
    # bias into this single projection (no per-layer broadcast adds).
    if use_vpu_xproj:
        # init_size is tiny: do I+1 broadcast-FMAs on the VPU instead of a
        # short-K MXU matmul (VPU slots have slack; shortens the MXU chain).
        wx = wx_ref[...].astype(jnp.float32)          # (Lp, I+1)
        xf = xT.astype(jnp.float32)
        xproj = wx[:, 0:1] * xf[0:1, :]
        for j in range(1, wx.shape[1]):
            xproj = xproj + wx[:, j:j + 1] * xf[j:j + 1, :]
    else:
        xproj = jnp.dot(wx_ref[...], xT,
                        preferred_element_type=jnp.float32)   # (Lp, TILE_B)

    # ---- inLayer: cur = LeakyReLU(W_in @ x + b_in) (bias via ones row) -----
    cur = _leaky_relu(
        jnp.dot(win_ref[...], xT, preferred_element_type=jnp.float32)
    ).astype(mdt)                                     # (H, TILE_B)
    buf_ref[0:H, :] = cur                             # slot 0

    # ---- hidden layer 0: `prev` is empty in torch -> cur + x terms only ----
    z = (jnp.dot(wcur0_ref[...], cur, preferred_element_type=jnp.float32)
         + xproj[0:H])
    cur = _leaky_relu(z).astype(mdt)
    buf_ref[H:2 * H, :] = cur                         # slot 1

    # ---- hidden layers 1..L-1: one fused K=2H dot over [slot0 | slot1] -----
    # (weight column halves pre-permuted per layer parity at init, so the
    #  ping-pong write below IS the "prev = cur" — no copy, no second dot.)
    for i in range(1, L):
        z = (jnp.dot(wcp_ref[i - 1], buf_ref[...],
                     preferred_element_type=jnp.float32)
             + xproj[i * H:(i + 1) * H])
        cur = _leaky_relu(z).astype(mdt)
        s = (i + 1) % 2
        buf_ref[s * H:(s + 1) * H, :] = cur           # overwrite the old prev

    # ---- output layer: fused K=2H dot, x/bias term from xproj --------------
    y = (jnp.dot(wout_ref[...], buf_ref[...],
                 preferred_element_type=jnp.float32)
         + xproj[L * H:L * H + 1])                    # (1, TILE_B)
    o_ref[...] = (jnp.tanh(y) + 1.0) * 0.5            # lane-dense store


# ---------------------------------------------------------------------------
# Wrapper
# ---------------------------------------------------------------------------
def skipconn_forward(x, kernel_params, meta):
    w_in_aug, wcur0, wcp, wx_pack, wout_cp = kernel_params
    L, H, I = meta
    mat_dtype = w_in_aug.dtype
    itemsize = jnp.dtype(mat_dtype).itemsize
    B = x.shape[0]
    rows_pad = wx_pack.shape[0]

    # ---- pick the batch tile (lanes) against a conservative VMEM budget ----
    # ~40 MiB keeps us under v7x's 64 MiB/TC; v5e/v6e (128 MiB) could raise.
    VMEM_BUDGET = 40 * 1024 * 1024
    resident_bytes = 2 * itemsize * sum(
        a.size for a in (w_in_aug, wcur0, wcp, wx_pack, wout_cp))
    tile_b = min(2048, _round_up(B, 128))
    while tile_b > 128:
        stream = 2 * (I + 1) * tile_b * itemsize + 2 * tile_b * 4
        live = 2 * H * tile_b * itemsize + (rows_pad + 3 * H) * tile_b * 4
        if resident_bytes + stream + live <= VMEM_BUDGET:
            break
        tile_b -= 128
    b_pad = _round_up(B, tile_b)

    # Batch on the lane axis: x transposed, padded, with a ones row appended
    # so every bias rides inside the matmuls.
    xT = jnp.zeros((I + 1, b_pad), mat_dtype)
    xT = xT.at[:I, :B].set(x.T.astype(mat_dtype))
    xT = xT.at[I, :].set(jnp.asarray(1.0, mat_dtype))

    kernel = functools.partial(
        skipconn_kernel, num_hidden_layers=L, hidden_size=H,
        use_vpu_xproj=(I + 1) <= 8)

    def _resident(a, mode):
        nd = a.ndim
        if mode is None:
            return pl.BlockSpec(a.shape, lambda b, nd=nd: (0,) * nd)
        return pl.BlockSpec(a.shape, lambda b, nd=nd: (0,) * nd,
                            pipeline_mode=mode)

    def _run(weight_mode):
        return pl.pallas_call(
            kernel,
            out_shape=jax.ShapeDtypeStruct((1, b_pad), jnp.float32),
            grid=(b_pad // tile_b,),
            in_specs=[
                pl.BlockSpec((I + 1, tile_b), lambda b: (0, b)),  # streamed x
                _resident(w_in_aug, weight_mode),
                _resident(wcur0, weight_mode),
                _resident(wcp, weight_mode),
                _resident(wx_pack, weight_mode),
                _resident(wout_cp, weight_mode),
            ],
            out_specs=pl.BlockSpec((1, tile_b), lambda b: (0, b)),
            scratch_shapes=[pltpu.VMEM((2 * H, tile_b), mat_dtype)],
            compiler_params=pltpu.CompilerParams(
                dimension_semantics=("parallel",),
                vmem_limit_bytes=48 * 1024 * 1024),
        )(xT, w_in_aug, wcur0, wcp, wx_pack, wout_cp)

    try:
        # Constant-index weights never re-fetch: single-buffer them (halves
        # their VMEM footprint; matters most on v7x).
        outT = _run(pl.Buffered(1))
    except Exception:
        # pipeline_mode not supported on this JAX version -> default buffering.
        outT = _run(None)

    return outT[0, :B].reshape(B, 1).astype(jnp.float32)


# ---------------------------------------------------------------------------
# Parameter construction (PyTorch nn.Linear-style init) + kernel-layout packing
# ---------------------------------------------------------------------------
def init_params(key, hidden_size, num_hidden_layers, init_size):
    """Returns PyTorch-faithful f32 reference params (torch layout)."""
    H, L, I = hidden_size, num_hidden_layers, init_size
    keys = jax.random.split(key, 2 * (L + 2))
    kit = iter(keys)

    def linear(fan_in, fan_out):            # torch layout: W is (out, in)
        bound = 1.0 / (fan_in ** 0.5)
        w = jax.random.uniform(next(kit), (fan_out, fan_in), jnp.float32,
                               -bound, bound)
        b = jax.random.uniform(next(kit), (fan_out,), jnp.float32,
                               -bound, bound)
        return w, b

    w_in, b_in = linear(I, H)
    hidden = []
    for i in range(L):
        in_size = 2 * H + I if i > 0 else H + I
        hidden.append(linear(in_size, H))
    w_out, b_out = linear(2 * H + I, 1)
    return (w_in, b_in, hidden, w_out, b_out)


def pack_kernel_params(ref_params, dtype=jnp.bfloat16):
    """Kernel layout: fused [slot0|slot1] weights (parity-permuted), packed
    x-projection with biases folded in, rows padded to a multiple of 8."""
    w_in, b_in, hidden, w_out, b_out = ref_params
    H, I = w_in.shape
    L = len(hidden)
    assert L >= 1

    w_in_aug = jnp.concatenate([w_in, b_in[:, None]], axis=1)       # (H, I+1)

    w0, b0 = hidden[0]
    wcur0 = w0[:, :H]                                               # (H, H)
    wx_rows = [jnp.concatenate([w0[:, H:], b0[:, None]], axis=1)]   # (H, I+1)

    wcp = []
    for i in range(1, L):
        w, b = hidden[i]
        cur_c, prev_c, x_c = w[:, :H], w[:, H:2 * H], w[:, 2 * H:]
        if i % 2 == 0:          # at layer i, slot i%2 holds `cur`
            wcp.append(jnp.concatenate([cur_c, prev_c], axis=1))    # (H, 2H)
        else:
            wcp.append(jnp.concatenate([prev_c, cur_c], axis=1))
        wx_rows.append(jnp.concatenate([x_c, b[:, None]], axis=1))

    oc, op, ox = w_out[:, :H], w_out[:, H:2 * H], w_out[:, 2 * H:]
    if L % 2 == 0:              # after layer L-1, slot L%2 holds `cur`
        wout_cp = jnp.concatenate([oc, op], axis=1)                 # (1, 2H)
    else:
        wout_cp = jnp.concatenate([op, oc], axis=1)
    wx_rows.append(jnp.concatenate([ox, b_out[:, None]], axis=1))   # (1, I+1)

    wx_pack = jnp.concatenate(wx_rows, axis=0)                      # (L*H+1, I+1)
    rows = wx_pack.shape[0]
    rows_pad = _round_up(rows, 8)                                   # sublane-align
    if rows_pad != rows:
        wx_pack = jnp.concatenate(
            [wx_pack, jnp.zeros((rows_pad - rows, I + 1), wx_pack.dtype)], 0)

    wcp_arr = jnp.stack(wcp) if wcp else jnp.zeros((1, H, 2 * H), jnp.float32)

    cast = lambda a: a.astype(dtype)
    kernel_params = tuple(map(cast, (w_in_aug, wcur0, wcp_arr, wx_pack, wout_cp)))
    return kernel_params, (L, H, I)


def reference_forward(x, ref_params):
    """Pure-JAX replica of the PyTorch forward (for validation)."""
    w_in, b_in, hidden, w_out, b_out = ref_params
    cur = _leaky_relu(x @ w_in.T + b_in)
    prev = jnp.zeros((x.shape[0], 0), jnp.float32)   # torch.tensor([])
    for w, b in hidden:
        combined = jnp.concatenate([cur, prev, x], axis=1)
        z = combined @ w.T + b
        prev = cur
        cur = _leaky_relu(z)
    y = jnp.concatenate([cur, prev, x], axis=1) @ w_out.T + b_out
    return (jnp.tanh(y) + 1.0) / 2.0


if __name__ == "__main__":
    B, HIDDEN, LAYERS, INIT = 8, 32, 3, 2

    key = jax.random.PRNGKey(0)
    kx, kp = jax.random.split(key)
    x = jax.random.normal(kx, (B, INIT), jnp.float32)

    ref_params = init_params(kp, HIDDEN, LAYERS, INIT)
    ref = reference_forward(x, ref_params)

    # Exact-path validation: f32 matmul operands.
    params_f32, meta = pack_kernel_params(ref_params, jnp.float32)
    out_f32 = jax.block_until_ready(skipconn_forward(x, params_f32, meta))
    assert out_f32.shape == (B, 1)
    assert jnp.allclose(out_f32, ref, atol=1e-5, rtol=1e-5), (out_f32, ref)

    # Perf-default path: bf16 matmul operands, f32 accumulation/elementwise.
    params_bf16, meta = pack_kernel_params(ref_params, jnp.bfloat16)
    out_bf16 = jax.block_until_ready(skipconn_forward(x, params_bf16, meta))
    assert out_bf16.shape == (B, 1)
    assert jnp.allclose(out_bf16, ref, atol=5e-2), (out_bf16, ref)

    print("KERNEL_OK")
</pallas_src>

<mosaic_0001>
module attributes {stable_mosaic.version = 11 : i64} {
  func.func @skipconn_kernel(%arg0: i32, %arg1: memref<3x128xf32, #tpu.memory_space<vmem>>, %arg2: memref<32x3xf32, #tpu.memory_space<vmem>>, %arg3: memref<32x32xf32, #tpu.memory_space<vmem>>, %arg4: memref<2x32x64xf32, #tpu.memory_space<vmem>>, %arg5: memref<104x3xf32, #tpu.memory_space<vmem>>, %arg6: memref<1x64xf32, #tpu.memory_space<vmem>>, %arg7: memref<1x128xf32, #tpu.memory_space<vmem>>, %arg8: memref<64x128xf32, #tpu.memory_space<vmem>>) attributes {dimension_semantics = [#tpu.dimension_semantics<parallel>], iteration_bounds = array<i64: 1>, scalar_prefetch = 0 : i64, scratch_operands = 1 : i64, tpu.core_type = #tpu.core_type<tc>, window_params = [{transform_indices = @transform_0, window_bounds = array<i64: 3, 128>}, {pipeline_mode = #tpu.pipeline_mode<synchronous>, transform_indices = @transform_1, window_bounds = array<i64: 32, 3>}, {pipeline_mode = #tpu.pipeline_mode<synchronous>, transform_indices = @transform_2, window_bounds = array<i64: 32, 32>}, {pipeline_mode = #tpu.pipeline_mode<synchronous>, transform_indices = @transform_3, window_bounds = array<i64: 2, 32, 64>}, {pipeline_mode = #tpu.pipeline_mode<synchronous>, transform_indices = @transform_4, window_bounds = array<i64: 104, 3>}, {pipeline_mode = #tpu.pipeline_mode<synchronous>, transform_indices = @transform_5, window_bounds = array<i64: 1, 64>}, {transform_indices = @transform_6, window_bounds = array<i64: 1, 128>}]} {
    %c0 = arith.constant 0 : index
    %c0_0 = arith.constant 0 : index
    %0 = vector.load %arg1[%c0, %c0_0] : memref<3x128xf32, #tpu.memory_space<vmem>>, vector<3x128xf32>
    %c0_1 = arith.constant 0 : index
    %c0_2 = arith.constant 0 : index
    %1 = vector.load %arg5[%c0_1, %c0_2] : memref<104x3xf32, #tpu.memory_space<vmem>>, vector<104x3xf32>
    %2 = vector.extract_strided_slice %1 {offsets = [0, 0], sizes = [104, 1], strides = [1, 1]} : vector<104x3xf32> to vector<104x1xf32>
    %3 = vector.extract_strided_slice %0 {offsets = [0, 0], sizes = [1, 128], strides = [1, 1]} : vector<3x128xf32> to vector<1x128xf32>
    %4 = vector.broadcast %2 : vector<104x1xf32> to vector<104x128xf32>
    %5 = vector.broadcast %3 : vector<1x128xf32> to vector<104x128xf32>
    %6 = arith.mulf %4, %5 : vector<104x128xf32>
    %7 = vector.extract_strided_slice %1 {offsets = [0, 1], sizes = [104, 1], strides = [1, 1]} : vector<104x3xf32> to vector<104x1xf32>
    %8 = vector.extract_strided_slice %0 {offsets = [1, 0], sizes = [1, 128], strides = [1, 1]} : vector<3x128xf32> to vector<1x128xf32>
    %9 = vector.broadcast %7 : vector<104x1xf32> to vector<104x128xf32>
    %10 = vector.broadcast %8 : vector<1x128xf32> to vector<104x128xf32>
    %11 = arith.mulf %9, %10 : vector<104x128xf32>
    %12 = arith.addf %6, %11 : vector<104x128xf32>
    %13 = vector.extract_strided_slice %1 {offsets = [0, 2], sizes = [104, 1], strides = [1, 1]} : vector<104x3xf32> to vector<104x1xf32>
    %14 = vector.extract_strided_slice %0 {offsets = [2, 0], sizes = [1, 128], strides = [1, 1]} : vector<3x128xf32> to vector<1x128xf32>
    %15 = vector.broadcast %13 : vector<104x1xf32> to vector<104x128xf32>
    %16 = vector.broadcast %14 : vector<1x128xf32> to vector<104x128xf32>
    %17 = arith.mulf %15, %16 : vector<104x128xf32>
    %18 = arith.addf %12, %17 : vector<104x128xf32>
    %c0_3 = arith.constant 0 : index
    %c0_4 = arith.constant 0 : index
    %19 = vector.load %arg2[%c0_3, %c0_4] : memref<32x3xf32, #tpu.memory_space<vmem>>, vector<32x3xf32>
    %cst = arith.constant dense<0.000000e+00> : vector<32x128xf32>
    %20 = tpu.matmul %19, %0, %cst {dimension_numbers = #tpu.dot_dimension_numbers<[1], [0], [0], [1], [0, 0, 1, 1], [], []>} : vector<32x3xf32>, vector<3x128xf32>, vector<32x128xf32> -> vector<32x128xf32>
    %cst_5 = arith.constant 0.000000e+00 : f32
    %21 = vector.broadcast %cst_5 : f32 to vector<32x128xf32>
    %22 = arith.cmpf oge, %20, %21 : vector<32x128xf32>
    %cst_6 = arith.constant 0.00999999977 : f32
    %23 = vector.broadcast %cst_6 : f32 to vector<32x128xf32>
    %24 = arith.mulf %23, %20 : vector<32x128xf32>
    %25 = arith.select %22, %20, %24 : vector<32x128xi1>, vector<32x128xf32>
    %c0_7 = arith.constant 0 : index
    %c0_8 = arith.constant 0 : index
    %26 = vector.load %arg8[%c0_7, %c0_8] : memref<64x128xf32, #tpu.memory_space<vmem>>, vector<32x128xf32>
    tpu.vector_store %arg8[%c0_7, %c0_8], %25 {strides = array<i32>} : memref<64x128xf32, #tpu.memory_space<vmem>>, vector<32x128xf32>,
    %c0_9 = arith.constant 0 : index
    %c0_10 = arith.constant 0 : index
    %27 = vector.load %arg3[%c0_9, %c0_10] : memref<32x32xf32, #tpu.memory_space<vmem>>, vector<32x32xf32>
    %cst_11 = arith.constant dense<0.000000e+00> : vector<32x128xf32>
    %28 = tpu.matmul %27, %25, %cst_11 {dimension_numbers = #tpu.dot_dimension_numbers<[1], [0], [0], [1], [0, 0, 1, 1], [], []>} : vector<32x32xf32>, vector<32x128xf32>, vector<32x128xf32> -> vector<32x128xf32>
    %29 = vector.extract_strided_slice %18 {offsets = [0, 0], sizes = [32, 128], strides = [1, 1]} : vector<104x128xf32> to vector<32x128xf32>
    %30 = arith.addf %28, %29 : vector<32x128xf32>
    %cst_12 = arith.constant 0.000000e+00 : f32
    %31 = vector.broadcast %cst_12 : f32 to vector<32x128xf32>
    %32 = arith.cmpf oge, %30, %31 : vector<32x128xf32>
    %cst_13 = arith.constant 0.00999999977 : f32
    %33 = vector.broadcast %cst_13 : f32 to vector<32x128xf32>
    %34 = arith.mulf %33, %30 : vector<32x128xf32>
    %35 = arith.select %32, %30, %34 : vector<32x128xi1>, vector<32x128xf32>
    %c32 = arith.constant 32 : index
    %c0_14 = arith.constant 0 : index
    %36 = vector.load %arg8[%c32, %c0_14] : memref<64x128xf32, #tpu.memory_space<vmem>>, vector<32x128xf32>
    tpu.vector_store %arg8[%c32, %c0_14], %35 {strides = array<i32>} : memref<64x128xf32, #tpu.memory_space<vmem>>, vector<32x128xf32>,
    %c0_15 = arith.constant 0 : index
    %c0_16 = arith.constant 0 : index
    %c0_17 = arith.constant 0 : index
    %37 = vector.load %arg4[%c0_15, %c0_16, %c0_17] : memref<2x32x64xf32, #tpu.memory_space<vmem>>, vector<1x32x64xf32>
    %38 = vector.shape_cast %37 : vector<1x32x64xf32> to vector<32x64xf32>
    %c0_18 = arith.constant 0 : index
    %c0_19 = arith.constant 0 : index
    %39 = vector.load %arg8[%c0_18, %c0_19] : memref<64x128xf32, #tpu.memory_space<vmem>>, vector<64x128xf32>
    %cst_20 = arith.constant dense<0.000000e+00> : vector<32x128xf32>
    %40 = tpu.matmul %38, %39, %cst_20 {dimension_numbers = #tpu.dot_dimension_numbers<[1], [0], [0], [1], [0, 0, 1, 1], [], []>} : vector<32x64xf32>, vector<64x128xf32>, vector<32x128xf32> -> vector<32x128xf32>
    %41 = vector.extract_strided_slice %18 {offsets = [32, 0], sizes = [32, 128], strides = [1, 1]} : vector<104x128xf32> to vector<32x128xf32>
    %42 = arith.addf %40, %41 : vector<32x128xf32>
    %cst_21 = arith.constant 0.000000e+00 : f32
    %43 = vector.broadcast %cst_21 : f32 to vector<32x128xf32>
    %44 = arith.cmpf oge, %42, %43 : vector<32x128xf32>
    %cst_22 = arith.constant 0.00999999977 : f32
    %45 = vector.broadcast %cst_22 : f32 to vector<32x128xf32>
    %46 = arith.mulf %45, %42 : vector<32x128xf32>
    %47 = arith.select %44, %42, %46 : vector<32x128xi1>, vector<32x128xf32>
    %c0_23 = arith.constant 0 : index
    %c0_24 = arith.constant 0 : index
    %48 = vector.load %arg8[%c0_23, %c0_24] : memref<64x128xf32, #tpu.memory_space<vmem>>, vector<32x128xf32>
    tpu.vector_store %arg8[%c0_23, %c0_24], %47 {strides = array<i32>} : memref<64x128xf32, #tpu.memory_space<vmem>>, vector<32x128xf32>,
    %c1 = arith.constant 1 : index
    %c0_25 = arith.constant 0 : index
    %c0_26 = arith.constant 0 : index
    %49 = vector.load %arg4[%c1, %c0_25, %c0_26] : memref<2x32x64xf32, #tpu.memory_space<vmem>>, vector<1x32x64xf32>
    %50 = vector.shape_cast %49 : vector<1x32x64xf32> to vector<32x64xf32>
    %c0_27 = arith.constant 0 : index
    %c0_28 = arith.constant 0 : index
    %51 = vector.load %arg8[%c0_27, %c0_28] : memref<64x128xf32, #tpu.memory_space<vmem>>, vector<64x128xf32>
    %cst_29 = arith.constant dense<0.000000e+00> : vector<32x128xf32>
    %52 = tpu.matmul %50, %51, %cst_29 {dimension_numbers = #tpu.dot_dimension_numbers<[1], [0], [0], [1], [0, 0, 1, 1], [], []>} : vector<32x64xf32>, vector<64x128xf32>, vector<32x128xf32> -> vector<32x128xf32>
    %53 = vector.extract_strided_slice %18 {offsets = [64, 0], sizes = [32, 128], strides = [1, 1]} : vector<104x128xf32> to vector<32x128xf32>
    %54 = arith.addf %52, %53 : vector<32x128xf32>
    %cst_30 = arith.constant 0.000000e+00 : f32
    %55 = vector.broadcast %cst_30 : f32 to vector<32x128xf32>
    %56 = arith.cmpf oge, %54, %55 : vector<32x128xf32>
    %cst_31 = arith.constant 0.00999999977 : f32
    %57 = vector.broadcast %cst_31 : f32 to vector<32x128xf32>
    %58 = arith.mulf %57, %54 : vector<32x128xf32>
    %59 = arith.select %56, %54, %58 : vector<32x128xi1>, vector<32x128xf32>
    %c32_32 = arith.constant 32 : index
    %c0_33 = arith.constant 0 : index
    %60 = vector.load %arg8[%c32_32, %c0_33] : memref<64x128xf32, #tpu.memory_space<vmem>>, vector<32x128xf32>
    tpu.vector_store %arg8[%c32_32, %c0_33], %59 {strides = array<i32>} : memref<64x128xf32, #tpu.memory_space<vmem>>, vector<32x128xf32>,
    %c0_34 = arith.constant 0 : index
    %c0_35 = arith.constant 0 : index
    %61 = vector.load %arg6[%c0_34, %c0_35] : memref<1x64xf32, #tpu.memory_space<vmem>>, vector<1x64xf32>
    %c0_36 = arith.constant 0 : index
    %c0_37 = arith.constant 0 : index
    %62 = vector.load %arg8[%c0_36, %c0_37] : memref<64x128xf32, #tpu.memory_space<vmem>>, vector<64x128xf32>
    %cst_38 = arith.constant dense<0.000000e+00> : vector<1x128xf32>
    %63 = tpu.matmul %61, %62, %cst_38 {dimension_numbers = #tpu.dot_dimension_numbers<[1], [0], [0], [1], [0, 0, 1, 1], [], []>} : vector<1x64xf32>, vector<64x128xf32>, vector<1x128xf32> -> vector<1x128xf32>
    %64 = vector.extract_strided_slice %18 {offsets = [96, 0], sizes = [1, 128], strides = [1, 1]} : vector<104x128xf32> to vector<1x128xf32>
    %65 = arith.addf %63, %64 : vector<1x128xf32>
    %66 = math.tanh %65 : vector<1x128xf32>
    %cst_39 = arith.constant 1.000000e+00 : f32
    %67 = vector.broadcast %cst_39 : f32 to vector<1x128xf32>
    %68 = arith.addf %66, %67 : vector<1x128xf32>
    %cst_40 = arith.constant 5.000000e-01 : f32
    %69 = vector.broadcast %cst_40 : f32 to vector<1x128xf32>
    %70 = arith.mulf %68, %69 : vector<1x128xf32>
    %c0_41 = arith.constant 0 : index
    %c0_42 = arith.constant 0 : index
    %71 = vector.load %arg7[%c0_41, %c0_42] : memref<1x128xf32, #tpu.memory_space<vmem>>, vector<1x128xf32>
    tpu.vector_store %arg7[%c0_41, %c0_42], %70 {strides = array<i32>} : memref<1x128xf32, #tpu.memory_space<vmem>>, vector<1x128xf32>,
    return
  }
  func.func @transform_0(%arg0: i32) -> (i32, i32) {
    %c0_i32 = arith.constant 0 : i32
    %c0_i32_0 = arith.constant 0 : i32
    return %c0_i32, %arg0 : i32, i32
  }
  func.func @transform_1(%arg0: i32) -> (i32, i32) {
    %c0_i32 = arith.constant 0 : i32
    %c0_i32_0 = arith.constant 0 : i32
    %c0_i32_1 = arith.constant 0 : i32
    return %c0_i32, %c0_i32_0 : i32, i32
  }
  func.func @transform_2(%arg0: i32) -> (i32, i32) {
    %c0_i32 = arith.constant 0 : i32
    %c0_i32_0 = arith.constant 0 : i32
    %c0_i32_1 = arith.constant 0 : i32
    return %c0_i32, %c0_i32_0 : i32, i32
  }
  func.func @transform_3(%arg0: i32) -> (i32, i32, i32) {
    %c0_i32 = arith.constant 0 : i32
    %c0_i32_0 = arith.constant 0 : i32
    %c0_i32_1 = arith.constant 0 : i32
    %c0_i32_2 = arith.constant 0 : i32
    return %c0_i32, %c0_i32_0, %c0_i32_1 : i32, i32, i32
  }
  func.func @transform_4(%arg0: i32) -> (i32, i32) {
    %c0_i32 = arith.constant 0 : i32
    %c0_i32_0 = arith.constant 0 : i32
    %c0_i32_1 = arith.constant 0 : i32
    return %c0_i32, %c0_i32_0 : i32, i32
  }
  func.func @transform_5(%arg0: i32) -> (i32, i32) {
    %c0_i32 = arith.constant 0 : i32
    %c0_i32_0 = arith.constant 0 : i32
    %c0_i32_1 = arith.constant 0 : i32
    return %c0_i32, %c0_i32_0 : i32, i32
  }
  func.func @transform_6(%arg0: i32) -> (i32, i32) {
    %c0_i32 = arith.constant 0 : i32
    %c0_i32_0 = arith.constant 0 : i32
    return %c0_i32, %arg0 : i32, i32
  }
}

module attributes {stable_mosaic.version = 11 : i64} {
  func.func @skipconn_kernel(%arg0: i32, %arg1: memref<3x128xf32, #tpu.memory_space<vmem>>, %arg2: memref<32x3xf32, #tpu.memory_space<vmem>>, %arg3: memref<32x32xf32, #tpu.memory_space<vmem>>, %arg4: memref<2x32x64xf32, #tpu.memory_space<vmem>>, %arg5: memref<104x3xf32, #tpu.memory_space<vmem>>, %arg6: memref<1x64xf32, #tpu.memory_space<vmem>>, %arg7: memref<1x128xf32, #tpu.memory_space<vmem>>, %arg8: memref<64x128xf32, #tpu.memory_space<vmem>>) attributes {dimension_semantics = [#tpu.dimension_semantics<parallel>], iteration_bounds = array<i64: 1>, scalar_prefetch = 0 : i64, scratch_operands = 1 : i64, tpu.core_type = #tpu.core_type<tc>, window_params = [{transform_indices = @transform_0, window_bounds = array<i64: 3, 128>}, {pipeline_mode = #tpu.pipeline_mode<synchronous>, transform_indices = @transform_1, window_bounds = array<i64: 32, 3>}, {pipeline_mode = #tpu.pipeline_mode<synchronous>, transform_indices = @transform_2, window_bounds = array<i64: 32, 32>}, {pipeline_mode = #tpu.pipeline_mode<synchronous>, transform_indices = @transform_3, window_bounds = array<i64: 2, 32, 64>}, {pipeline_mode = #tpu.pipeline_mode<synchronous>, transform_indices = @transform_4, window_bounds = array<i64: 104, 3>}, {pipeline_mode = #tpu.pipeline_mode<synchronous>, transform_indices = @transform_5, window_bounds = array<i64: 1, 64>}, {transform_indices = @transform_6, window_bounds = array<i64: 1, 128>}]} {
    %c0 = arith.constant 0 : index
    %c0_0 = arith.constant 0 : index
    %0 = vector.load %arg1[%c0, %c0_0] : memref<3x128xf32, #tpu.memory_space<vmem>>, vector<3x128xf32>
    %c0_1 = arith.constant 0 : index
    %c0_2 = arith.constant 0 : index
    %1 = vector.load %arg5[%c0_1, %c0_2] : memref<104x3xf32, #tpu.memory_space<vmem>>, vector<104x3xf32>
    %2 = vector.extract_strided_slice %1 {offsets = [0, 0], sizes = [104, 1], strides = [1, 1]} : vector<104x3xf32> to vector<104x1xf32>
    %3 = vector.extract_strided_slice %0 {offsets = [0, 0], sizes = [1, 128], strides = [1, 1]} : vector<3x128xf32> to vector<1x128xf32>
    %4 = vector.broadcast %2 : vector<104x1xf32> to vector<104x128xf32>
    %5 = vector.broadcast %3 : vector<1x128xf32> to vector<104x128xf32>
    %6 = arith.mulf %4, %5 : vector<104x128xf32>
    %7 = vector.extract_strided_slice %1 {offsets = [0, 1], sizes = [104, 1], strides = [1, 1]} : vector<104x3xf32> to vector<104x1xf32>
    %8 = vector.extract_strided_slice %0 {offsets = [1, 0], sizes = [1, 128], strides = [1, 1]} : vector<3x128xf32> to vector<1x128xf32>
    %9 = vector.broadcast %7 : vector<104x1xf32> to vector<104x128xf32>
    %10 = vector.broadcast %8 : vector<1x128xf32> to vector<104x128xf32>
    %11 = arith.mulf %9, %10 : vector<104x128xf32>
    %12 = arith.addf %6, %11 : vector<104x128xf32>
    %13 = vector.extract_strided_slice %1 {offsets = [0, 2], sizes = [104, 1], strides = [1, 1]} : vector<104x3xf32> to vector<104x1xf32>
    %14 = vector.extract_strided_slice %0 {offsets = [2, 0], sizes = [1, 128], strides = [1, 1]} : vector<3x128xf32> to vector<1x128xf32>
    %15 = vector.broadcast %13 : vector<104x1xf32> to vector<104x128xf32>
    %16 = vector.broadcast %14 : vector<1x128xf32> to vector<104x128xf32>
    %17 = arith.mulf %15, %16 : vector<104x128xf32>
    %18 = arith.addf %12, %17 : vector<104x128xf32>
    %c0_3 = arith.constant 0 : index
    %c0_4 = arith.constant 0 : index
    %19 = vector.load %arg2[%c0_3, %c0_4] : memref<32x3xf32, #tpu.memory_space<vmem>>, vector<32x3xf32>
    %cst = arith.constant dense<0.000000e+00> : vector<32x128xf32>
    %20 = tpu.matmul %19, %0, %cst {dimension_numbers = #tpu.dot_dimension_numbers<[1], [0], [0], [1], [0, 0, 1, 1], [], []>} : vector<32x3xf32>, vector<3x128xf32>, vector<32x128xf32> -> vector<32x128xf32>
    %cst_5 = arith.constant 0.000000e+00 : f32
    %21 = vector.broadcast %cst_5 : f32 to vector<32x128xf32>
    %22 = arith.cmpf oge, %20, %21 : vector<32x128xf32>
    %cst_6 = arith.constant 0.00999999977 : f32
    %23 = vector.broadcast %cst_6 : f32 to vector<32x128xf32>
    %24 = arith.mulf %23, %20 : vector<32x128xf32>
    %25 = arith.select %22, %20, %24 : vector<32x128xi1>, vector<32x128xf32>
    %c0_7 = arith.constant 0 : index
    %c0_8 = arith.constant 0 : index
    %26 = vector.load %arg8[%c0_7, %c0_8] : memref<64x128xf32, #tpu.memory_space<vmem>>, vector<32x128xf32>
    tpu.vector_store %arg8[%c0_7, %c0_8], %25 {strides = array<i32>} : memref<64x128xf32, #tpu.memory_space<vmem>>, vector<32x128xf32>,
    %c0_9 = arith.constant 0 : index
    %c0_10 = arith.constant 0 : index
    %27 = vector.load %arg3[%c0_9, %c0_10] : memref<32x32xf32, #tpu.memory_space<vmem>>, vector<32x32xf32>
    %cst_11 = arith.constant dense<0.000000e+00> : vector<32x128xf32>
    %28 = tpu.matmul %27, %25, %cst_11 {dimension_numbers = #tpu.dot_dimension_numbers<[1], [0], [0], [1], [0, 0, 1, 1], [], []>} : vector<32x32xf32>, vector<32x128xf32>, vector<32x128xf32> -> vector<32x128xf32>
    %29 = vector.extract_strided_slice %18 {offsets = [0, 0], sizes = [32, 128], strides = [1, 1]} : vector<104x128xf32> to vector<32x128xf32>
    %30 = arith.addf %28, %29 : vector<32x128xf32>
    %cst_12 = arith.constant 0.000000e+00 : f32
    %31 = vector.broadcast %cst_12 : f32 to vector<32x128xf32>
    %32 = arith.cmpf oge, %30, %31 : vector<32x128xf32>
    %cst_13 = arith.constant 0.00999999977 : f32
    %33 = vector.broadcast %cst_13 : f32 to vector<32x128xf32>
    %34 = arith.mulf %33, %30 : vector<32x128xf32>
    %35 = arith.select %32, %30, %34 : vector<32x128xi1>, vector<32x128xf32>
    %c32 = arith.constant 32 : index
    %c0_14 = arith.constant 0 : index
    %36 = vector.load %arg8[%c32, %c0_14] : memref<64x128xf32, #tpu.memory_space<vmem>>, vector<32x128xf32>
    tpu.vector_store %arg8[%c32, %c0_14], %35 {strides = array<i32>} : memref<64x128xf32, #tpu.memory_space<vmem>>, vector<32x128xf32>,
    %c0_15 = arith.constant 0 : index
    %c0_16 = arith.constant 0 : index
    %c0_17 = arith.constant 0 : index
    %37 = vector.load %arg4[%c0_15, %c0_16, %c0_17] : memref<2x32x64xf32, #tpu.memory_space<vmem>>, vector<1x32x64xf32>
    %38 = vector.shape_cast %37 : vector<1x32x64xf32> to vector<32x64xf32>
    %c0_18 = arith.constant 0 : index
    %c0_19 = arith.constant 0 : index
    %39 = vector.load %arg8[%c0_18, %c0_19] : memref<64x128xf32, #tpu.memory_space<vmem>>, vector<64x128xf32>
    %cst_20 = arith.constant dense<0.000000e+00> : vector<32x128xf32>
    %40 = tpu.matmul %38, %39, %cst_20 {dimension_numbers = #tpu.dot_dimension_numbers<[1], [0], [0], [1], [0, 0, 1, 1], [], []>} : vector<32x64xf32>, vector<64x128xf32>, vector<32x128xf32> -> vector<32x128xf32>
    %41 = vector.extract_strided_slice %18 {offsets = [32, 0], sizes = [32, 128], strides = [1, 1]} : vector<104x128xf32> to vector<32x128xf32>
    %42 = arith.addf %40, %41 : vector<32x128xf32>
    %cst_21 = arith.constant 0.000000e+00 : f32
    %43 = vector.broadcast %cst_21 : f32 to vector<32x128xf32>
    %44 = arith.cmpf oge, %42, %43 : vector<32x128xf32>
    %cst_22 = arith.constant 0.00999999977 : f32
    %45 = vector.broadcast %cst_22 : f32 to vector<32x128xf32>
    %46 = arith.mulf %45, %42 : vector<32x128xf32>
    %47 = arith.select %44, %42, %46 : vector<32x128xi1>, vector<32x128xf32>
    %c0_23 = arith.constant 0 : index
    %c0_24 = arith.constant 0 : index
    %48 = vector.load %arg8[%c0_23, %c0_24] : memref<64x128xf32, #tpu.memory_space<vmem>>, vector<32x128xf32>
    tpu.vector_store %arg8[%c0_23, %c0_24], %47 {strides = array<i32>} : memref<64x128xf32, #tpu.memory_space<vmem>>, vector<32x128xf32>,
    %c1 = arith.constant 1 : index
    %c0_25 = arith.constant 0 : index
    %c0_26 = arith.constant 0 : index
    %49 = vector.load %arg4[%c1, %c0_25, %c0_26] : memref<2x32x64xf32, #tpu.memory_space<vmem>>, vector<1x32x64xf32>
    %50 = vector.shape_cast %49 : vector<1x32x64xf32> to vector<32x64xf32>
    %c0_27 = arith.constant 0 : index
    %c0_28 = arith.constant 0 : index
    %51 = vector.load %arg8[%c0_27, %c0_28] : memref<64x128xf32, #tpu.memory_space<vmem>>, vector<64x128xf32>
    %cst_29 = arith.constant dense<0.000000e+00> : vector<32x128xf32>
    %52 = tpu.matmul %50, %51, %cst_29 {dimension_numbers = #tpu.dot_dimension_numbers<[1], [0], [0], [1], [0, 0, 1, 1], [], []>} : vector<32x64xf32>, vector<64x128xf32>, vector<32x128xf32> -> vector<32x128xf32>
    %53 = vector.extract_strided_slice %18 {offsets = [64, 0], sizes = [32, 128], strides = [1, 1]} : vector<104x128xf32> to vector<32x128xf32>
    %54 = arith.addf %52, %53 : vector<32x128xf32>
    %cst_30 = arith.constant 0.000000e+00 : f32
    %55 = vector.broadcast %cst_30 : f32 to vector<32x128xf32>
    %56 = arith.cmpf oge, %54, %55 : vector<32x128xf32>
    %cst_31 = arith.constant 0.00999999977 : f32
    %57 = vector.broadcast %cst_31 : f32 to vector<32x128xf32>
    %58 = arith.mulf %57, %54 : vector<32x128xf32>
    %59 = arith.select %56, %54, %58 : vector<32x128xi1>, vector<32x128xf32>
    %c32_32 = arith.constant 32 : index
    %c0_33 = arith.constant 0 : index
    %60 = vector.load %arg8[%c32_32, %c0_33] : memref<64x128xf32, #tpu.memory_space<vmem>>, vector<32x128xf32>
    tpu.vector_store %arg8[%c32_32, %c0_33], %59 {strides = array<i32>} : memref<64x128xf32, #tpu.memory_space<vmem>>, vector<32x128xf32>,
    %c0_34 = arith.constant 0 : index
    %c0_35 = arith.constant 0 : index
    %61 = vector.load %arg6[%c0_34, %c0_35] : memref<1x64xf32, #tpu.memory_space<vmem>>, vector<1x64xf32>
    %c0_36 = arith.constant 0 : index
    %c0_37 = arith.constant 0 : index
    %62 = vector.load %arg8[%c0_36, %c0_37] : memref<64x128xf32, #tpu.memory_space<vmem>>, vector<64x128xf32>
    %cst_38 = arith.constant dense<0.000000e+00> : vector<1x128xf32>
    %63 = tpu.matmul %61, %62, %cst_38 {dimension_numbers = #tpu.dot_dimension_numbers<[1], [0], [0], [1], [0, 0, 1, 1], [], []>} : vector<1x64xf32>, vector<64x128xf32>, vector<1x128xf32> -> vector<1x128xf32>
    %64 = vector.extract_strided_slice %18 {offsets = [96, 0], sizes = [1, 128], strides = [1, 1]} : vector<104x128xf32> to vector<1x128xf32>
    %65 = arith.addf %63, %64 : vector<1x128xf32>
    %66 = math.tanh %65 : vector<1x128xf32>
    %cst_39 = arith.constant 1.000000e+00 : f32
    %67 = vector.broadcast %cst_39 : f32 to vector<1x128xf32>
    %68 = arith.addf %66, %67 : vector<1x128xf32>
    %cst_40 = arith.constant 5.000000e-01 : f32
    %69 = vector.broadcast %cst_40 : f32 to vector<1x128xf32>
    %70 = arith.mulf %68, %69 : vector<1x128xf32>
    %c0_41 = arith.constant 0 : index
    %c0_42 = arith.constant 0 : index
    %71 = vector.load %arg7[%c0_41, %c0_42] : memref<1x128xf32, #tpu.memory_space<vmem>>, vector<1x128xf32>
    tpu.vector_store %arg7[%c0_41, %c0_42], %70 {strides = array<i32>} : memref<1x128xf32, #tpu.memory_space<vmem>>, vector<1x128xf32>,
    return
  }
  func.func @transform_0(%arg0: i32) -> (i32, i32) {
    %c0_i32 = arith.constant 0 : i32
    %c0_i32_0 = arith.constant 0 : i32
    return %c0_i32, %arg0 : i32, i32
  }
  func.func @transform_1(%arg0: i32) -> (i32, i32) {
    %c0_i32 = arith.constant 0 : i32
    %c0_i32_0 = arith.constant 0 : i32
    %c0_i32_1 = arith.constant 0 : i32
    return %c0_i32, %c0_i32_0 : i32, i32
  }
  func.func @transform_2(%arg0: i32) -> (i32, i32) {
    %c0_i32 = arith.constant 0 : i32
    %c0_i32_0 = arith.constant 0 : i32
    %c0_i32_1 = arith.constant 0 : i32
    return %c0_i32, %c0_i32_0 : i32, i32
  }
  func.func @transform_3(%arg0: i32) -> (i32, i32, i32) {
    %c0_i32 = arith.constant 0 : i32
    %c0_i32_0 = arith.constant 0 : i32
    %c0_i32_1 = arith.constant 0 : i32
    %c0_i32_2 = arith.constant 0 : i32
    return %c0_i32, %c0_i32_0, %c0_i32_1 : i32, i32, i32
  }
  func.func @transform_4(%arg0: i32) -> (i32, i32) {
    %c0_i32 = arith.constant 0 : i32
    %c0_i32_0 = arith.constant 0 : i32
    %c0_i32_1 = arith.constant 0 : i32
    return %c0_i32, %c0_i32_0 : i32, i32
  }
  func.func @transform_5(%arg0: i32) -> (i32, i32) {
    %c0_i32 = arith.constant 0 : i32
    %c0_i32_0 = arith.constant 0 : i32
    %c0_i32_1 = arith.constant 0 : i32
    return %c0_i32, %c0_i32_0 : i32, i32
  }
  func.func @transform_6(%arg0: i32) -> (i32, i32) {
    %c0_i32 = arith.constant 0 : i32
    %c0_i32_0 = arith.constant 0 : i32
    return %c0_i32, %arg0 : i32, i32
  }
}

</mosaic_0001>

<bundles_post_ra>
// kernel: tpu_custom_call.1
= control target key start
LH: loop header
LB: loop body
LE: loop exit
PB: predicated region body
PF: predicated region fallthrough
CT: control target
= control target key end

     0   :  { %vm292_vm0 = vcmask 1042432   ;;  %vm279_vm1 = vcmask 23552   ;;  %s922_s0 = inlined_call_operand.vmem [shape: f32[3,128], index: 0, kind: input, shape index: {}]   ;;  %s923_s1 = inlined_call_operand.vmem [shape: f32[32,3], index: 1, kind: input, shape index: {}]   ;;  %s924_s2 = inlined_call_operand.vmem [shape: f32[32,32], index: 2, kind: input, shape index: {}]   ;;  %s925_s3 = inlined_call_operand.vmem [shape: f32[2,32,64], index: 3, kind: input, shape index: {}]   ;;  %s926_s4 = inlined_call_operand.vmem [shape: f32[104,3], index: 4, kind: input, shape index: {}]   ;;  %s927_s5 = inlined_call_operand.vmem [shape: f32[1,64], index: 5, kind: input, shape index: {}]   ;;  %s928_s6 = inlined_call_operand.hbm [shape: f32[1,128], index: 6, kind: output, shape index: {}]  }
   0x1   :  { %v714_v0 = vld [vmem:[%s922_s0] sm:$0x7] }
   0x2   :  { %v275_v1 = vld [vmem:[%s923_s1] sm:$0xff]  ;;  %595 = vmatpush.msk.msra.mxu0 %vm292_vm0, %v714_v0 }
   0x3   :  { %596 = vmatmul.msk.f32.vlgmr.msra.gmra.mxu0 %vm279_vm1, %v275_v1 }
   0x4   :  { %11 = vsyncpa [#allocation4], 0  ;;  %v276_v2 = vld [vmem:[%s923_s1 + $0x8] sm:$0xff]  ;;  %v277_v3 = vld [vmem:[%s923_s1 + $0x10] sm:$0xff]  ;;  %v672_v6 = vmov 0   ;;  %v673_v7 = vmov 1  }
   0x5   :  { %v278_v4 = vld [vmem:[%s923_s1 + $0x18] sm:$0xff]  ;;  %v27_v5 = vld [vmem:[%s926_s4 + $0x10] sm:$0xff]  ;;  %623 = vset.pattern.permute.xlu1 %v672_v6  ;;  %621 = vset.pattern.permute.xlu0 %v673_v7  ;;  %v26_v9 = vld [vmem:[%s926_s4 + $0x8] sm:$0xff]  ;;  %v674_v12 = vmov 2   ;;  %vm345_vm6 = vcmask 261120   ;;  %v783_v41 = vperm.slane %v714_v0, 0 }
   0x6   :  { %50 = vperm.xlu1 %623, %v27_v5   ;;  %v28_v8 = vld [vmem:[%s926_s4 + $0x18] sm:$0xff]  ;;  %v25_v11 = vld [vmem:[%s926_s4] sm:$0xff]  ;;  %625 = vset.pattern.permute.xlu2 %v674_v12  ;;  %v342_v25 = vld [vmem:[%s924_s2 + $0x8] sm:$0xff]  ;;  %v786_v42 = vperm.slane %v714_v0, 1  ;;  %v789_v43 = vperm.slane %v714_v0, 2  ;;  %vm415_vm11 = vcmask 523264  }
   0x7   :  { %130 = vperm.xlu0 %621, %v28_v8   ;;  %209 = vperm.xlu2 %625, %v28_v8   ;;  %v341_v23 = vld [vmem:[%s924_s2] sm:$0xff]  ;;  %v343_v26 = vld [vmem:[%s924_s2 + $0x10] sm:$0xff]  ;;  %v344_v27 = vld [vmem:[%s924_s2 + $0x18] sm:$0xff]  ;;  %s586_s29 = sshll.u32 %s928_s6, 4  ;;  %s587_s29 = int_to_ptr.hbm [resolvable:$true] %s586_s29 }
   0x8   :  { %v32_v38 = vld [vmem:[%s926_s4 + $0x38] sm:$0xff]  ;;  %v31_v40 = vld [vmem:[%s926_s4 + $0x30] sm:$0xff]  ;;  %v30_v49 = vld [vmem:[%s926_s4 + $0x28] sm:$0xff] }
   0xb   :  { %597 = vmatmul.msk.f32.gmra.mxu0 %vm279_vm1, %v276_v2 }
   0xe   :  { %624 = vset.pattern.permute.xlu1 %v673_v7 }
   0xf   :  { %126 = vperm.xlu1 %624, %v27_v5   ;;  %622 = vset.pattern.permute.xlu0 %v672_v6 }
  0x10   :  { %55 = vperm.xlu0 %622, %v28_v8   ;;  %626 = vset.pattern.permute.xlu2 %v672_v6 }
  0x11   :  { %45 = vperm.xlu2 %626, %v26_v9  }
  0x13   :  { %598 = vmatmul.msk.f32.gmra.mxu0 %vm279_vm1, %v277_v3  ;;  %v29_v3 = vld [vmem:[%s926_s4 + $0x20] sm:$0xff] }
  0x17   :  { %122 = vperm.xlu1 %624, %v26_v9  }
  0x18   :  { %40 = vperm.xlu0 %622, %v25_v11  }
  0x19   :  { %627 = vset.pattern.permute.xlu2 %v674_v12 }
  0x1a   :  { %205 = vperm.xlu2 %627, %v27_v5  }
  0x1b   :  { %599 = vmatmul.msk.f32.gmra.mxu0 %vm279_vm1, %v278_v4 }
  0x1f   :  { %118 = vperm.xlu1 %624, %v25_v11  }
  0x20   :  { %630 = vset.pattern.permute.xlu0 %v673_v7 }
  0x21   :  { %146 = vperm.xlu0 %630, %v32_v38  }
  0x22   :  { %201 = vperm.xlu2 %627, %v26_v9  }
  0x27   :  { %628 = vset.pattern.permute.xlu1 %v674_v12 }
  0x28   :  { %197 = vperm.xlu1 %628, %v25_v11  }
  0x29   :  { %138 = vperm.xlu0 %630, %v30_v49  }
  0x2a   :  { %629 = vset.pattern.permute.xlu2 %v672_v6 }
  0x2b   :  { %75 = vperm.xlu2 %629, %v32_v38  }
  0x30   :  { %631 = vset.pattern.permute.xlu1 %v672_v6 }
  0x31   :  { %70 = vperm.xlu1 %631, %v31_v40   ;;  %134 = vperm.xlu0 %630, %v29_v3  }
  0x33   :  { %632 = vset.pattern.permute.xlu2 %v673_v7 }
  0x34   :  { %142 = vperm.xlu2 %632, %v31_v40  }
  0x39   :  { %633 = vset.pattern.permute.xlu1 %v674_v12  ;;  %636 = vset.pattern.permute.xlu0 %v672_v6 }
  0x3a   :  { %225 = vperm.xlu1 %633, %v32_v38  }
  0x3c   :  { %634 = vset.pattern.permute.xlu2 %v672_v6 }
  0x3d   :  { %65 = vperm.xlu2 %634, %v30_v49  }
  0x42   :  { %221 = vperm.xlu1 %633, %v31_v40  }
  0x45   :  { %60 = vperm.xlu2 %634, %v29_v3  }
  0x4a   :  { %217 = vperm.xlu1 %633, %v30_v49  }
  0x4d   :  { %635 = vset.pattern.permute.xlu2 %v674_v12 }
  0x4e   :  { %213 = vperm.xlu2 %635, %v29_v3  }
  0x52   :  { %637 = vset.pattern.permute.xlu1 %v673_v7 }
  0x56   :  { %638 = vset.pattern.permute.xlu2 %v672_v6 }
  0x61   :  { %v210_v29 = vpop.permute.xlu2 %209 }
  0x62   :  { %v252_v61 = vmul.f32 %v789_v43, %v210_v29 }
  0x6b   :  { %v46_v32 = vpop.permute.xlu2 %45 }
  0x6c   :  { %v105_v48 = vmul.f32 %v783_v41, %v46_v32 }
  0x74   :  { %v206_v36 = vpop.permute.xlu2 %205 }
  0x75   :  { %v251_v59 = vmul.f32 %v789_v43, %v206_v36 }
  0x78   :  { %v51_v28 = vpop.permute.xlu1 %50 }
  0x79   :  { %v131_v31 = vpop.permute.xlu0 %130  ;;  %v106_v45 = vmul.f32 %v783_v41, %v51_v28  ;;  %v36_v28 = vld [vmem:[%s926_s4 + $0x58] sm:$0xff] }
  0x7a   :  { %v173_v50 = vmul.f32 %v786_v42, %v131_v31  ;;  %162 = vperm.xlu1 %637, %v36_v28   ;;  %95 = vperm.xlu0 %636, %v36_v28  }
  0x7c   :  { %v202_v51 = vpop.permute.xlu2 %201 }
  0x7d   :  { %v250_v60 = vmul.f32 %v789_v43, %v202_v51 }
  0x80   :  { %v313_v10 = vpop.f32.mrf.mxu0 }
  0x81   :  { %v329_v20 = vmul.f32 0.01, %v313_v10  ;;  %vm325_vm5 = vcmp.ge.f32.partialorder %v313_v10, 0.0  ;;  %v127_v30 = vpop.permute.xlu1 %126 }
  0x82   :  { %v56_v35 = vpop.permute.xlu0 %55  ;;  %v172_v46 = vmul.f32 %v786_v42, %v127_v30 }
  0x83   :  { %v763_v24 = vsel %vm325_vm5, %v313_v10, %v329_v20  ;;  %v107_v52 = vmul.f32 %v783_v41, %v56_v35  ;;  %v34_v35 = vld [vmem:[%s926_s4 + $0x48] sm:$0xff] }
  0x84   :  { %v185_v57 = vadd.f32 %v172_v46, %v106_v45  ;;  %85 = vperm.xlu0 %636, %v34_v35  }
  0x85   :  { %v186_v62 = vadd.f32 %v173_v50, %v107_v52 }
  0x86   :  { %v264_v2 = vadd.f32 %v251_v59, %v185_v57 }
  0x87   :  { %v265_v8 = vadd.f32 %v252_v61, %v186_v62 }
  0x88   :  { %v316_v13 = vpop.f32.mrf.mxu0 }
  0x89   :  { %v330_v18 = vmul.f32 0.01, %v316_v13  ;;  %vm326_vm4 = vcmp.ge.f32.partialorder %v316_v13, 0.0  ;;  %v123_v33 = vpop.permute.xlu1 %122 }
  0x8a   :  { %v41_v44 = vpop.permute.xlu0 %40  ;;  %v171_v47 = vmul.f32 %v786_v42, %v123_v33  ;;  %v35_v33 = vld [vmem:[%s926_s4 + $0x50] sm:$0xff] }
  0x8b   :  { %v757_v22 = vsel %vm326_vm4, %v316_v13, %v330_v18  ;;  %v104_v54 = vmul.f32 %v783_v41, %v41_v44  ;;  %158 = vperm.xlu1 %637, %v35_v33   ;;  %90 = vperm.xlu2 %638, %v35_v33  }
  0x8c   :  { %v184_v58 = vadd.f32 %v171_v47, %v105_v48 }
  0x8e   :  { %v263_v1 = vadd.f32 %v250_v60, %v184_v58 }
  0x90   :  { %v319_v14 = vpop.f32.mrf.mxu0 }
  0x91   :  { %v331_v16 = vmul.f32 0.01, %v319_v14  ;;  %vm327_vm3 = vcmp.ge.f32.partialorder %v319_v14, 0.0  ;;  %v119_v37 = vpop.permute.xlu1 %118 }
  0x92   :  { %v170_v53 = vmul.f32 %v786_v42, %v119_v37 }
  0x93   :  { %v754_v21 = vsel %vm327_vm3, %v319_v14, %v331_v16  ;;  %v147_v30 = vpop.permute.xlu0 %146  ;;  %154 = vperm.xlu1 %637, %v34_v35   ;;  %639 = vset.pattern.permute.xlu2 %v674_v12 }
  0x94   :  { %v183_v63 = vadd.f32 %v170_v53, %v104_v54  ;;  %241 = vperm.xlu2 %639, %v36_v28   ;;  %v177_v51 = vmul.f32 %v786_v42, %v147_v30  ;;  %v37_v30 = vld [vmem:[%s926_s4 + $0x60] sm:$0xff] }
  0x98   :  { %v322_v15 = vpop.f32.mrf.mxu0 }
  0x99   :  { %v332_v17 = vmul.f32 0.01, %v322_v15  ;;  %vm328_vm2 = vcmp.ge.f32.partialorder %v322_v15, 0.0 }
  0x9a   :  { %v198_v55 = vpop.permute.xlu1 %197 }
  0x9b   :  { %v751_v19 = vsel %vm328_vm2, %v322_v15, %v332_v17  ;;  %v249_v0 = vmul.f32 %v789_v43, %v198_v55  ;;  %v139_v36 = vpop.permute.xlu0 %138 }
  0x9c   :  { %370 = vmatpush.msra.mxu1 %v751_v19  ;;  %v175_v48 = vmul.f32 %v786_v42, %v139_v36  ;;  %237 = vperm.xlu2 %639, %v35_v33  }
  0x9d   :  { %v262_v4 = vadd.f32 %v249_v0, %v183_v63 }
  0x9e   :  { %371 = vmatpush.msra.mxu1 %v754_v21 }
  0xa0   :  { %372 = vmatpush.msra.mxu1 %v757_v22 }
  0xa2   :  { %373 = vmatpush.msra.mxu1 %v763_v24 }
  0xa3   :  { %600 = vmatmul.msk.f32.vlgmr.msra.gmra.mxu1 %vm345_vm6, %v341_v23  ;;  %v135_v44 = vpop.permute.xlu0 %134 }
  0xa4   :  { %v174_v53 = vmul.f32 %v786_v42, %v135_v44  ;;  %233 = vperm.xlu2 %639, %v34_v35  }
  0xab   :  { %601 = vmatmul.msk.f32.gmra.mxu1 %vm345_vm6, %v342_v25 }
  0xac   :  { %642 = vset.pattern.permute.xlu2 %v673_v7  ;;  %v610_v7 = vld [vmem:[%s925_s3 + $0x30] sm:$0xff] }
  0xad   :  { %166 = vperm.xlu2 %642, %v37_v30  }
  0xb3   :  { %602 = vmatmul.msk.f32.gmra.mxu1 %vm345_vm6, %v343_v26  ;;  %v403_v26 = vld [vmem:[%s925_s3] sm:$0xff] }
  0xbb   :  { %603 = vmatmul.msk.f32.gmra.mxu1 %vm345_vm6, %v344_v27  ;;  %v71_v27 = vpop.permute.xlu1 %70 }
  0xbc   :  { %v110_v47 = vmul.f32 %v783_v41, %v71_v27 }
  0xc3   :  { %v226_v31 = vpop.permute.xlu1 %225 }
  0xc4   :  { %v256_v61 = vmul.f32 %v789_v43, %v226_v31 }
  0xcb   :  { %v222_v37 = vpop.permute.xlu1 %221 }
  0xcc   :  { %v255_v58 = vmul.f32 %v789_v43, %v222_v37 }
  0xd3   :  { %v218_v49 = vpop.permute.xlu1 %217 }
  0xd4   :  { %v254_v59 = vmul.f32 %v789_v43, %v218_v49 }
 0x120   :  { %v375_v34 = vpop.f32.mrf.mxu1 }
 0x121   :  { %v376_v13 = vadd.f32 %v375_v34, %v262_v4 }
 0x123   :  { %v391_v20 = vmul.f32 0.01, %v376_v13  ;;  %vm387_vm10 = vcmp.ge.f32.partialorder %v376_v13, 0.0 }
 0x125   :  { %v395_v25 = vsel %vm387_vm10, %v376_v13, %v391_v20 }
 0x128   :  { %v378_v39 = vpop.f32.mrf.mxu1 }
 0x129   :  { %v379_v10 = vadd.f32 %v378_v39, %v263_v1  ;;  %v33_v39 = vld [vmem:[%s926_s4 + $0x40] sm:$0xff] }
 0x12a   :  { %80 = vperm.xlu0 %636, %v33_v39   ;;  %150 = vperm.xlu1 %637, %v33_v39  }
 0x12b   :  { %v392_v17 = vmul.f32 0.01, %v379_v10  ;;  %vm388_vm9 = vcmp.ge.f32.partialorder %v379_v10, 0.0 }
 0x12d   :  { %v396_v23 = vsel %vm388_vm9, %v379_v10, %v392_v17 }
 0x130   :  { %v381_v56 = vpop.f32.mrf.mxu1 }
 0x131   :  { %v382_v5 = vadd.f32 %v381_v56, %v264_v2 }
 0x132   :  { %640 = vset.pattern.permute.xlu0 %v674_v12  ;;  %641 = vset.pattern.permute.xlu1 %v672_v6 }
 0x133   :  { %v393_v15 = vmul.f32 0.01, %v382_v5  ;;  %vm389_vm8 = vcmp.ge.f32.partialorder %v382_v5, 0.0  ;;  %229 = vperm.xlu0 %640, %v33_v39   ;;  %100 = vperm.xlu1 %641, %v37_v30  }
 0x135   :  { %v397_v18 = vsel %vm389_vm8, %v382_v5, %v393_v15 }
 0x138   :  { %v384_v9 = vpop.f32.mrf.mxu1 }
 0x139   :  { %v385_v11 = vadd.f32 %v384_v9, %v265_v8 }
 0x13b   :  { %vm390_vm7 = vcmp.ge.f32.partialorder %v385_v11, 0.0  ;;  %v394_v14 = vmul.f32 0.01, %v385_v11  ;;  %643 = vset.pattern.permute.xlu1 %v674_v12 }
 0x13c   :  { %245 = vperm.xlu1 %643, %v37_v30  }
 0x13d   :  { %v398_v16 = vsel %vm390_vm7, %v385_v11, %v394_v14 }
 0x13e   :  { %436 = vmatpush.msra.mxu2 %v398_v16  ;;  %506 = vmatpush.msra.mxu3 %v398_v16 }
 0x140   :  { %437 = vmatpush.msra.mxu2 %v397_v18  ;;  %507 = vmatpush.msra.mxu3 %v397_v18  ;;  %v608_v18 = vld [vmem:[%s925_s3 + $0x20] sm:$0xff] }
 0x142   :  { %438 = vmatpush.msra.mxu2 %v396_v23  ;;  %508 = vmatpush.msra.mxu3 %v396_v23  ;;  %v609_v23 = vld [vmem:[%s925_s3 + $0x28] sm:$0xff] }
 0x144   :  { %439 = vmatpush.msra.mxu2 %v395_v25  ;;  %509 = vmatpush.msra.mxu3 %v395_v25  ;;  %v611_v25 = vld [vmem:[%s925_s3 + $0x38] sm:$0xff] }
 0x146   :  { %440 = vmatpush.msra.mxu2 %v751_v19  ;;  %v404_v19 = vld [vmem:[%s925_s3 + $0x8] sm:$0xff] }
 0x148   :  { %441 = vmatpush.msra.mxu2 %v754_v21  ;;  %v405_v21 = vld [vmem:[%s925_s3 + $0x10] sm:$0xff] }
 0x14a   :  { %442 = vmatpush.msra.mxu2 %v757_v22  ;;  %v406_v22 = vld [vmem:[%s925_s3 + $0x18] sm:$0xff] }
 0x14c   :  { %443 = vmatpush.msra.mxu2 %v763_v24  ;;  %v76_v24 = vpop.permute.xlu2 %75 }
 0x14d   :  { %604 = vmatmul.msk.f32.vlgmr.msra.gmra.mxu2 %vm415_vm11, %v403_v26  ;;  %v111_v50 = vmul.f32 %v783_v41, %v76_v24  ;;  %v163_v26 = vpop.permute.xlu1 %162 }
 0x14e   :  { %v181_v37 = vmul.f32 %v786_v42, %v163_v26 }
 0x14f   :  { %v190_v60 = vadd.f32 %v177_v51, %v111_v50 }
 0x151   :  { %v269_v4 = vadd.f32 %v256_v61, %v190_v60 }
 0x154   :  { %v143_v29 = vpop.permute.xlu2 %142 }
 0x155   :  { %605 = vmatmul.msk.f32.gmra.mxu2 %vm415_vm11, %v404_v19  ;;  %v176_v45 = vmul.f32 %v786_v42, %v143_v29  ;;  %v96_v19 = vpop.permute.xlu0 %95 }
 0x157   :  { %v189_v56 = vadd.f32 %v176_v45, %v110_v47 }
 0x159   :  { %v268_v1 = vadd.f32 %v255_v58, %v189_v56 }
 0x15c   :  { %v66_v32 = vpop.permute.xlu2 %65 }
 0x15d   :  { %606 = vmatmul.msk.f32.gmra.mxu2 %vm415_vm11, %v405_v21  ;;  %v109_v46 = vmul.f32 %v783_v41, %v66_v32  ;;  %v86_v24 = vpop.permute.xlu0 %85 }
 0x15e   :  { %v113_v39 = vmul.f32 %v783_v41, %v86_v24 }
 0x15f   :  { %v188_v57 = vadd.f32 %v175_v48, %v109_v46 }
 0x161   :  { %v267_v0 = vadd.f32 %v254_v59, %v188_v57 }
 0x164   :  { %v61_v38 = vpop.permute.xlu2 %60 }
 0x165   :  { %607 = vmatmul.msk.f32.gmra.mxu2 %vm415_vm11, %v406_v22  ;;  %v108_v52 = vmul.f32 %v783_v41, %v61_v38  ;;  %v159_v22 = vpop.permute.xlu1 %158  ;;  %v115_v38 = vmul.f32 %v783_v41, %v96_v19 }
 0x166   :  { %v180_v35 = vmul.f32 %v786_v42, %v159_v22 }
 0x167   :  { %v187_v62 = vadd.f32 %v174_v53, %v108_v52  ;;  %v194_v50 = vadd.f32 %v181_v37, %v115_v38 }
 0x16c   :  { %v214_v54 = vpop.permute.xlu2 %213 }
 0x16d   :  { %v253_v63 = vmul.f32 %v789_v43, %v214_v54  ;;  %v155_v29 = vpop.permute.xlu1 %154 }
 0x16f   :  { %v266_v2 = vadd.f32 %v253_v63, %v187_v62 }
 0x174   :  { %v91_v21 = vpop.permute.xlu2 %90 }
 0x175   :  { %v114_v36 = vmul.f32 %v783_v41, %v91_v21 }
 0x177   :  { %v193_v48 = vadd.f32 %v180_v35, %v114_v36 }
 0x17c   :  { %v242_v27 = vpop.permute.xlu2 %241 }
 0x17d   :  { %v260_v51 = vmul.f32 %v789_v43, %v242_v27 }
 0x17f   :  { %v273_v60 = vadd.f32 %v260_v51, %v194_v50 }
 0x184   :  { %v238_v32 = vpop.permute.xlu2 %237 }
 0x185   :  { %v259_v49 = vmul.f32 %v789_v43, %v238_v32 }
 0x187   :  { %v272_v56 = vadd.f32 %v259_v49, %v193_v48 }
 0x18c   :  { %v234_v47 = vpop.permute.xlu2 %233 }
 0x19c   :  { %v81_v31 = vpop.permute.xlu0 %80 }
 0x19d   :  { %v112_v44 = vmul.f32 %v783_v41, %v81_v31 }
 0x1a5   :  { %v230_v46 = vpop.permute.xlu0 %229 }
 0x1a6   :  { %v257_v54 = vmul.f32 %v789_v43, %v230_v46 }
 0x1d0   :  { %v445_v34 = vpop.f32.mrf.mxu2 }
 0x1d1   :  { %v446_v10 = vadd.f32 %v445_v34, %v266_v2  ;;  %v151_v34 = vpop.permute.xlu1 %150 }
 0x1d2   :  { %v178_v45 = vmul.f32 %v786_v42, %v151_v34 }
 0x1d3   :  { %v461_v17 = vmul.f32 0.01, %v446_v10  ;;  %vm457_vm15 = vcmp.ge.f32.partialorder %v446_v10, 0.0 }
 0x1d4   :  { %v191_v53 = vadd.f32 %v178_v45, %v112_v44 }
 0x1d5   :  { %v876_v20 = vsel %vm457_vm15, %v446_v10, %v461_v17 }
 0x1d6   :  { %v270_v57 = vadd.f32 %v257_v54, %v191_v53 }
 0x1d8   :  { %v448_v40 = vpop.f32.mrf.mxu2 }
 0x1d9   :  { %v449_v8 = vadd.f32 %v448_v40, %v267_v0  ;;  %v179_v40 = vmul.f32 %v786_v42, %v155_v29 }
 0x1db   :  { %v462_v15 = vmul.f32 0.01, %v449_v8  ;;  %vm458_vm14 = vcmp.ge.f32.partialorder %v449_v8, 0.0  ;;  %v192_v52 = vadd.f32 %v179_v40, %v113_v39 }
 0x1dd   :  { %v870_v6 = vsel %vm458_vm14, %v449_v8, %v462_v15  ;;  %v167_v15 = vpop.permute.xlu2 %166 }
 0x1e0   :  { %v451_v55 = vpop.f32.mrf.mxu2 }
 0x1e1   :  { %v452_v3 = vadd.f32 %v451_v55, %v268_v1  ;;  %v258_v55 = vmul.f32 %v789_v43, %v234_v47 }
 0x1e3   :  { %v463_v13 = vmul.f32 0.01, %v452_v3  ;;  %vm459_vm13 = vcmp.ge.f32.partialorder %v452_v3, 0.0  ;;  %v271_v58 = vadd.f32 %v258_v55, %v192_v52 }
 0x1e5   :  { %v866_v16 = vsel %vm459_vm13, %v452_v3, %v463_v13  ;;  %v101_v13 = vpop.permute.xlu1 %100 }
 0x1e6   :  { %v116_v17 = vmul.f32 %v783_v41, %v101_v13 }
 0x1e8   :  { %v454_v5 = vpop.f32.mrf.mxu2 }
 0x1e9   :  { %v455_v9 = vadd.f32 %v454_v5, %v269_v4 }
 0x1eb   :  { %vm460_vm12 = vcmp.ge.f32.partialorder %v455_v9, 0.0  ;;  %v464_v11 = vmul.f32 0.01, %v455_v9 }
 0x1ed   :  { %v863_v14 = vsel %vm460_vm12, %v455_v9, %v464_v11  ;;  %v543_v11 = vld [vmem:[%s927_s5] sm:$0x1]  ;;  %s675_s5 = smov [#allocation3]  }
 0x1ee   :  { %510 = vmatpush.msra.mxu3 %v863_v14  ;;  %s584_s27 = sshll.u32 %s675_s5, 4  ;;  %s585_s27 = int_to_ptr.vmem [resolvable:$true] %s584_s27 }
 0x1f0   :  { %511 = vmatpush.msra.mxu3 %v866_v16 }
 0x1f2   :  { %512 = vmatpush.msra.mxu3 %v870_v6 }
 0x1f4   :  { %513 = vmatpush.msra.mxu3 %v876_v20 }
 0x1f5   :  { %612 = vmatmul.msk.f32.vlgmr.msra.gmra.mxu3 %vm415_vm11, %v608_v18  ;;  %v182_v18 = vmul.f32 %v786_v42, %v167_v15 }
 0x1fd   :  { %613 = vmatmul.msk.f32.gmra.mxu3 %vm415_vm11, %v609_v23  ;;  %v246_v23 = vpop.permute.xlu1 %245 }
 0x205   :  { %614 = vmatmul.msk.f32.gmra.mxu3 %vm415_vm11, %v610_v7 }
 0x20d   :  { %615 = vmatmul.msk.f32.gmra.mxu3 %vm415_vm11, %v611_v25 }
 0x278   :  { %v515_v28 = vpop.f32.mrf.mxu3 }
 0x279   :  { %v516_v0 = vadd.f32 %v515_v28, %v270_v57 }
 0x27b   :  { %v531_v8 = vmul.f32 0.01, %v516_v0  ;;  %vm527_vm3 = vcmp.ge.f32.partialorder %v516_v0, 0.0 }
 0x27d   :  { %v535_v10 = vsel %vm527_vm3, %v516_v0, %v531_v8 }
 0x280   :  { %v518_v33 = vpop.f32.mrf.mxu3 }
 0x281   :  { %v519_v62 = vadd.f32 %v518_v33, %v271_v58 }
 0x283   :  { %v532_v4 = vmul.f32 0.01, %v519_v62  ;;  %vm528_vm2 = vcmp.ge.f32.partialorder %v519_v62, 0.0 }
 0x285   :  { %v536_v9 = vsel %vm528_vm2, %v519_v62, %v532_v4 }
 0x288   :  { %v521_v12 = vpop.f32.mrf.mxu3 }
 0x289   :  { %v522_v59 = vadd.f32 %v521_v12, %v272_v56 }
 0x28b   :  { %v533_v2 = vmul.f32 0.01, %v522_v59  ;;  %vm529_vm1 = vcmp.ge.f32.partialorder %v522_v59, 0.0 }
 0x28d   :  { %v537_v5 = vsel %vm529_vm1, %v522_v59, %v533_v2 }
 0x290   :  { %v524_v61 = vpop.f32.mrf.mxu3 }
 0x291   :  { %v525_v63 = vadd.f32 %v524_v61, %v273_v60 }
 0x293   :  { %vm530_vm0 = vcmp.ge.f32.partialorder %v525_v63, 0.0  ;;  %v534_v1 = vmul.f32 0.01, %v525_v63 }
 0x295   :  { %v538_v3 = vsel %vm530_vm0, %v525_v63, %v534_v1 }
 0x296   :  { %563 = vmatpush.msrb.mxu0 %v538_v3 }
 0x298   :  { %564 = vmatpush.msrb.mxu0 %v537_v5 }
 0x29a   :  { %565 = vmatpush.msrb.mxu0 %v536_v9 }
 0x29c   :  { %566 = vmatpush.msrb.mxu0 %v535_v10 }
 0x29e   :  { %567 = vmatpush.msrb.mxu0 %v863_v14  ;;  %v195_v14 = vadd.f32 %v182_v18, %v116_v17 }
 0x2a0   :  { %568 = vmatpush.msrb.mxu0 %v866_v16  ;;  %v261_v16 = vmul.f32 %v789_v43, %v246_v23 }
 0x2a2   :  { %569 = vmatpush.msrb.mxu0 %v870_v6  ;;  %v274_v7 = vadd.f32 %v261_v16, %v195_v14 }
 0x2a4   :  { %570 = vmatpush.msrb.mxu0 %v876_v20 }
 0x2a5   :  { %616 = vmatmul.msk.f32.vlgmr.msrb.gmra.mxu0 %vm415_vm11, %v543_v11 }
 0x322   :  { %v572_v6 = vpop.f32.mrf.mxu0 }
 0x323   :  { %v573_v25 = vadd.f32 %v572_v6, %v274_v7 }
 0x325   :  { %644 = vtanh.f32 %v573_v25 }
 0x32b   :  { %v645_v26 = vpop.eup %644 }
 0x32c   :  { %v576_v20 = vadd.f32 1.0, %v645_v26 }
 0x32e   :  { %v577_v19 = vmul.f32 0.5, %v576_v20 }
 0x330   :  { %578 = vst [vmem:[#allocation3] sm:$0x1] %v577_v19 }
 0x331   :  { %589 = dma.vmem_to_hbm [thread:$0]  %s585_s27, 16, %s587_s29, [#allocation4]  }
 0x332   :  { %670 = dma.done.wait [#allocation4], 16  }
 0x333   :  { %671 = vsyncadd [#allocation4], 4294967280 }
 0x334   :  { %594 = vsyncpa [#allocation4], 1 }

// kernel: tpu_custom_call.1
= control target key start
LH: loop header
LB: loop body
LE: loop exit
PB: predicated region body
PF: predicated region fallthrough
CT: control target
= control target key end

     0   :  { %vm292_vm0 = vcmask 1042432   ;;  %vm279_vm1 = vcmask 23552   ;;  %s922_s0 = inlined_call_operand.vmem [shape: f32[3,128], index: 0, kind: input, shape index: {}]   ;;  %s923_s1 = inlined_call_operand.vmem [shape: f32[32,3], index: 1, kind: input, shape index: {}]   ;;  %s924_s2 = inlined_call_operand.vmem [shape: f32[32,32], index: 2, kind: input, shape index: {}]   ;;  %s925_s3 = inlined_call_operand.vmem [shape: f32[2,32,64], index: 3, kind: input, shape index: {}]   ;;  %s926_s4 = inlined_call_operand.vmem [shape: f32[104,3], index: 4, kind: input, shape index: {}]   ;;  %s927_s5 = inlined_call_operand.vmem [shape: f32[1,64], index: 5, kind: input, shape index: {}]   ;;  %s928_s6 = inlined_call_operand.hbm [shape: f32[1,128], index: 6, kind: output, shape index: {}]  }
   0x1   :  { %v714_v0 = vld [vmem:[%s922_s0] sm:$0x7] }
   0x2   :  { %v275_v1 = vld [vmem:[%s923_s1] sm:$0xff]  ;;  %595 = vmatpush.msk.msra.mxu0 %vm292_vm0, %v714_v0 }
   0x3   :  { %596 = vmatmul.msk.f32.vlgmr.msra.gmra.mxu0 %vm279_vm1, %v275_v1 }
   0x4   :  { %11 = vsyncpa [#allocation4], 0  ;;  %v276_v2 = vld [vmem:[%s923_s1 + $0x8] sm:$0xff]  ;;  %v277_v3 = vld [vmem:[%s923_s1 + $0x10] sm:$0xff]  ;;  %v672_v6 = vmov 0   ;;  %v673_v7 = vmov 1  }
   0x5   :  { %v278_v4 = vld [vmem:[%s923_s1 + $0x18] sm:$0xff]  ;;  %v27_v5 = vld [vmem:[%s926_s4 + $0x10] sm:$0xff]  ;;  %623 = vset.pattern.permute.xlu1 %v672_v6  ;;  %621 = vset.pattern.permute.xlu0 %v673_v7  ;;  %v26_v9 = vld [vmem:[%s926_s4 + $0x8] sm:$0xff]  ;;  %v674_v12 = vmov 2   ;;  %vm345_vm6 = vcmask 261120   ;;  %v783_v41 = vperm.slane %v714_v0, 0 }
   0x6   :  { %50 = vperm.xlu1 %623, %v27_v5   ;;  %v28_v8 = vld [vmem:[%s926_s4 + $0x18] sm:$0xff]  ;;  %v25_v11 = vld [vmem:[%s926_s4] sm:$0xff]  ;;  %625 = vset.pattern.permute.xlu2 %v674_v12  ;;  %v342_v25 = vld [vmem:[%s924_s2 + $0x8] sm:$0xff]  ;;  %v786_v42 = vperm.slane %v714_v0, 1  ;;  %v789_v43 = vperm.slane %v714_v0, 2  ;;  %vm415_vm11 = vcmask 523264  }
   0x7   :  { %130 = vperm.xlu0 %621, %v28_v8   ;;  %209 = vperm.xlu2 %625, %v28_v8   ;;  %v341_v23 = vld [vmem:[%s924_s2] sm:$0xff]  ;;  %v343_v26 = vld [vmem:[%s924_s2 + $0x10] sm:$0xff]  ;;  %v344_v27 = vld [vmem:[%s924_s2 + $0x18] sm:$0xff]  ;;  %s586_s29 = sshll.u32 %s928_s6, 4  ;;  %s587_s29 = int_to_ptr.hbm [resolvable:$true] %s586_s29 }
   0x8   :  { %v32_v38 = vld [vmem:[%s926_s4 + $0x38] sm:$0xff]  ;;  %v31_v40 = vld [vmem:[%s926_s4 + $0x30] sm:$0xff]  ;;  %v30_v49 = vld [vmem:[%s926_s4 + $0x28] sm:$0xff] }
   0xb   :  { %597 = vmatmul.msk.f32.gmra.mxu0 %vm279_vm1, %v276_v2 }
   0xe   :  { %624 = vset.pattern.permute.xlu1 %v673_v7 }
   0xf   :  { %126 = vperm.xlu1 %624, %v27_v5   ;;  %622 = vset.pattern.permute.xlu0 %v672_v6 }
  0x10   :  { %55 = vperm.xlu0 %622, %v28_v8   ;;  %626 = vset.pattern.permute.xlu2 %v672_v6 }
  0x11   :  { %45 = vperm.xlu2 %626, %v26_v9  }
  0x13   :  { %598 = vmatmul.msk.f32.gmra.mxu0 %vm279_vm1, %v277_v3  ;;  %v29_v3 = vld [vmem:[%s926_s4 + $0x20] sm:$0xff] }
  0x17   :  { %122 = vperm.xlu1 %624, %v26_v9  }
  0x18   :  { %40 = vperm.xlu0 %622, %v25_v11  }
  0x19   :  { %627 = vset.pattern.permute.xlu2 %v674_v12 }
  0x1a   :  { %205 = vperm.xlu2 %627, %v27_v5  }
  0x1b   :  { %599 = vmatmul.msk.f32.gmra.mxu0 %vm279_vm1, %v278_v4 }
  0x1f   :  { %118 = vperm.xlu1 %624, %v25_v11  }
  0x20   :  { %630 = vset.pattern.permute.xlu0 %v673_v7 }
  0x21   :  { %146 = vperm.xlu0 %630, %v32_v38  }
  0x22   :  { %201 = vperm.xlu2 %627, %v26_v9  }
  0x27   :  { %628 = vset.pattern.permute.xlu1 %v674_v12 }
  0x28   :  { %197 = vperm.xlu1 %628, %v25_v11  }
  0x29   :  { %138 = vperm.xlu0 %630, %v30_v49  }
  0x2a   :  { %629 = vset.pattern.permute.xlu2 %v672_v6 }
  0x2b   :  { %75 = vperm.xlu2 %629, %v32_v38  }
  0x30   :  { %631 = vset.pattern.permute.xlu1 %v672_v6 }
  0x31   :  { %70 = vperm.xlu1 %631, %v31_v40   ;;  %134 = vperm.xlu0 %630, %v29_v3  }
  0x33   :  { %632 = vset.pattern.permute.xlu2 %v673_v7 }
  0x34   :  { %142 = vperm.xlu2 %632, %v31_v40  }
  0x39   :  { %633 = vset.pattern.permute.xlu1 %v674_v12  ;;  %636 = vset.pattern.permute.xlu0 %v672_v6 }
  0x3a   :  { %225 = vperm.xlu1 %633, %v32_v38  }
  0x3c   :  { %634 = vset.pattern.permute.xlu2 %v672_v6 }
  0x3d   :  { %65 = vperm.xlu2 %634, %v30_v49  }
  0x42   :  { %221 = vperm.xlu1 %633, %v31_v40  }
  0x45   :  { %60 = vperm.xlu2 %634, %v29_v3  }
  0x4a   :  { %217 = vperm.xlu1 %633, %v30_v49  }
  0x4d   :  { %635 = vset.pattern.permute.xlu2 %v674_v12 }
  0x4e   :  { %213 = vperm.xlu2 %635, %v29_v3  }
  0x52   :  { %637 = vset.pattern.permute.xlu1 %v673_v7 }
  0x56   :  { %638 = vset.pattern.permute.xlu2 %v672_v6 }
  0x61   :  { %v210_v29 = vpop.permute.xlu2 %209 }
  0x62   :  { %v252_v61 = vmul.f32 %v789_v43, %v210_v29 }
  0x6b   :  { %v46_v32 = vpop.permute.xlu2 %45 }
  0x6c   :  { %v105_v48 = vmul.f32 %v783_v41, %v46_v32 }
  0x74   :  { %v206_v36 = vpop.permute.xlu2 %205 }
  0x75   :  { %v251_v59 = vmul.f32 %v789_v43, %v206_v36 }
  0x78   :  { %v51_v28 = vpop.permute.xlu1 %50 }
  0x79   :  { %v131_v31 = vpop.permute.xlu0 %130  ;;  %v106_v45 = vmul.f32 %v783_v41, %v51_v28  ;;  %v36_v28 = vld [vmem:[%s926_s4 + $0x58] sm:$0xff] }
  0x7a   :  { %v173_v50 = vmul.f32 %v786_v42, %v131_v31  ;;  %162 = vperm.xlu1 %637, %v36_v28   ;;  %95 = vperm.xlu0 %636, %v36_v28  }
  0x7c   :  { %v202_v51 = vpop.permute.xlu2 %201 }
  0x7d   :  { %v250_v60 = vmul.f32 %v789_v43, %v202_v51 }
  0x80   :  { %v313_v10 = vpop.f32.mrf.mxu0 }
  0x81   :  { %v329_v20 = vmul.f32 0.01, %v313_v10  ;;  %vm325_vm5 = vcmp.ge.f32.partialorder %v313_v10, 0.0  ;;  %v127_v30 = vpop.permute.xlu1 %126 }
  0x82   :  { %v56_v35 = vpop.permute.xlu0 %55  ;;  %v172_v46 = vmul.f32 %v786_v42, %v127_v30 }
  0x83   :  { %v763_v24 = vsel %vm325_vm5, %v313_v10, %v329_v20  ;;  %v107_v52 = vmul.f32 %v783_v41, %v56_v35  ;;  %v34_v35 = vld [vmem:[%s926_s4 + $0x48] sm:$0xff] }
  0x84   :  { %v185_v57 = vadd.f32 %v172_v46, %v106_v45  ;;  %85 = vperm.xlu0 %636, %v34_v35  }
  0x85   :  { %v186_v62 = vadd.f32 %v173_v50, %v107_v52 }
  0x86   :  { %v264_v2 = vadd.f32 %v251_v59, %v185_v57 }
  0x87   :  { %v265_v8 = vadd.f32 %v252_v61, %v186_v62 }
  0x88   :  { %v316_v13 = vpop.f32.mrf.mxu0 }
  0x89   :  { %v330_v18 = vmul.f32 0.01, %v316_v13  ;;  %vm326_vm4 = vcmp.ge.f32.partialorder %v316_v13, 0.0  ;;  %v123_v33 = vpop.permute.xlu1 %122 }
  0x8a   :  { %v41_v44 = vpop.permute.xlu0 %40  ;;  %v171_v47 = vmul.f32 %v786_v42, %v123_v33  ;;  %v35_v33 = vld [vmem:[%s926_s4 + $0x50] sm:$0xff] }
  0x8b   :  { %v757_v22 = vsel %vm326_vm4, %v316_v13, %v330_v18  ;;  %v104_v54 = vmul.f32 %v783_v41, %v41_v44  ;;  %158 = vperm.xlu1 %637, %v35_v33   ;;  %90 = vperm.xlu2 %638, %v35_v33  }
  0x8c   :  { %v184_v58 = vadd.f32 %v171_v47, %v105_v48 }
  0x8e   :  { %v263_v1 = vadd.f32 %v250_v60, %v184_v58 }
  0x90   :  { %v319_v14 = vpop.f32.mrf.mxu0 }
  0x91   :  { %v331_v16 = vmul.f32 0.01, %v319_v14  ;;  %vm327_vm3 = vcmp.ge.f32.partialorder %v319_v14, 0.0  ;;  %v119_v37 = vpop.permute.xlu1 %118 }
  0x92   :  { %v170_v53 = vmul.f32 %v786_v42, %v119_v37 }
  0x93   :  { %v754_v21 = vsel %vm327_vm3, %v319_v14, %v331_v16  ;;  %v147_v30 = vpop.permute.xlu0 %146  ;;  %154 = vperm.xlu1 %637, %v34_v35   ;;  %639 = vset.pattern.permute.xlu2 %v674_v12 }
  0x94   :  { %v183_v63 = vadd.f32 %v170_v53, %v104_v54  ;;  %241 = vperm.xlu2 %639, %v36_v28   ;;  %v177_v51 = vmul.f32 %v786_v42, %v147_v30  ;;  %v37_v30 = vld [vmem:[%s926_s4 + $0x60] sm:$0xff] }
  0x98   :  { %v322_v15 = vpop.f32.mrf.mxu0 }
  0x99   :  { %v332_v17 = vmul.f32 0.01, %v322_v15  ;;  %vm328_vm2 = vcmp.ge.f32.partialorder %v322_v15, 0.0 }
  0x9a   :  { %v198_v55 = vpop.permute.xlu1 %197 }
  0x9b   :  { %v751_v19 = vsel %vm328_vm2, %v322_v15, %v332_v17  ;;  %v249_v0 = vmul.f32 %v789_v43, %v198_v55  ;;  %v139_v36 = vpop.permute.xlu0 %138 }
  0x9c   :  { %370 = vmatpush.msra.mxu1 %v751_v19  ;;  %v175_v48 = vmul.f32 %v786_v42, %v139_v36  ;;  %237 = vperm.xlu2 %639, %v35_v33  }
  0x9d   :  { %v262_v4 = vadd.f32 %v249_v0, %v183_v63 }
  0x9e   :  { %371 = vmatpush.msra.mxu1 %v754_v21 }
  0xa0   :  { %372 = vmatpush.msra.mxu1 %v757_v22 }
  0xa2   :  { %373 = vmatpush.msra.mxu1 %v763_v24 }
  0xa3   :  { %600 = vmatmul.msk.f32.vlgmr.msra.gmra.mxu1 %vm345_vm6, %v341_v23  ;;  %v135_v44 = vpop.permute.xlu0 %134 }
  0xa4   :  { %v174_v53 = vmul.f32 %v786_v42, %v135_v44  ;;  %233 = vperm.xlu2 %639, %v34_v35  }
  0xab   :  { %601 = vmatmul.msk.f32.gmra.mxu1 %vm345_vm6, %v342_v25 }
  0xac   :  { %642 = vset.pattern.permute.xlu2 %v673_v7  ;;  %v610_v7 = vld [vmem:[%s925_s3 + $0x30] sm:$0xff] }
  0xad   :  { %166 = vperm.xlu2 %642, %v37_v30  }
  0xb3   :  { %602 = vmatmul.msk.f32.gmra.mxu1 %vm345_vm6, %v343_v26  ;;  %v403_v26 = vld [vmem:[%s925_s3] sm:$0xff] }
  0xbb   :  { %603 = vmatmul.msk.f32.gmra.mxu1 %vm345_vm6, %v344_v27  ;;  %v71_v27 = vpop.permute.xlu1 %70 }
  0xbc   :  { %v110_v47 = vmul.f32 %v783_v41, %v71_v27 }
  0xc3   :  { %v226_v31 = vpop.permute.xlu1 %225 }
  0xc4   :  { %v256_v61 = vmul.f32 %v789_v43, %v226_v31 }
  0xcb   :  { %v222_v37 = vpop.permute.xlu1 %221 }
  0xcc   :  { %v255_v58 = vmul.f32 %v789_v43, %v222_v37 }
  0xd3   :  { %v218_v49 = vpop.permute.xlu1 %217 }
  0xd4   :  { %v254_v59 = vmul.f32 %v789_v43, %v218_v49 }
 0x120   :  { %v375_v34 = vpop.f32.mrf.mxu1 }
 0x121   :  { %v376_v13 = vadd.f32 %v375_v34, %v262_v4 }
 0x123   :  { %v391_v20 = vmul.f32 0.01, %v376_v13  ;;  %vm387_vm10 = vcmp.ge.f32.partialorder %v376_v13, 0.0 }
 0x125   :  { %v395_v25 = vsel %vm387_vm10, %v376_v13, %v391_v20 }
 0x128   :  { %v378_v39 = vpop.f32.mrf.mxu1 }
 0x129   :  { %v379_v10 = vadd.f32 %v378_v39, %v263_v1  ;;  %v33_v39 = vld [vmem:[%s926_s4 + $0x40] sm:$0xff] }
 0x12a   :  { %80 = vperm.xlu0 %636, %v33_v39   ;;  %150 = vperm.xlu1 %637, %v33_v39  }
 0x12b   :  { %v392_v17 = vmul.f32 0.01, %v379_v10  ;;  %vm388_vm9 = vcmp.ge.f32.partialorder %v379_v10, 0.0 }
 0x12d   :  { %v396_v23 = vsel %vm388_vm9, %v379_v10, %v392_v17 }
 0x130   :  { %v381_v56 = vpop.f32.mrf.mxu1 }
 0x131   :  { %v382_v5 = vadd.f32 %v381_v56, %v264_v2 }
 0x132   :  { %640 = vset.pattern.permute.xlu0 %v674_v12  ;;  %641 = vset.pattern.permute.xlu1 %v672_v6 }
 0x133   :  { %v393_v15 = vmul.f32 0.01, %v382_v5  ;;  %vm389_vm8 = vcmp.ge.f32.partialorder %v382_v5, 0.0  ;;  %229 = vperm.xlu0 %640, %v33_v39   ;;  %100 = vperm.xlu1 %641, %v37_v30  }
 0x135   :  { %v397_v18 = vsel %vm389_vm8, %v382_v5, %v393_v15 }
 0x138   :  { %v384_v9 = vpop.f32.mrf.mxu1 }
 0x139   :  { %v385_v11 = vadd.f32 %v384_v9, %v265_v8 }
 0x13b   :  { %vm390_vm7 = vcmp.ge.f32.partialorder %v385_v11, 0.0  ;;  %v394_v14 = vmul.f32 0.01, %v385_v11  ;;  %643 = vset.pattern.permute.xlu1 %v674_v12 }
 0x13c   :  { %245 = vperm.xlu1 %643, %v37_v30  }
 0x13d   :  { %v398_v16 = vsel %vm390_vm7, %v385_v11, %v394_v14 }
 0x13e   :  { %436 = vmatpush.msra.mxu2 %v398_v16  ;;  %506 = vmatpush.msra.mxu3 %v398_v16 }
 0x140   :  { %437 = vmatpush.msra.mxu2 %v397_v18  ;;  %507 = vmatpush.msra.mxu3 %v397_v18  ;;  %v608_v18 = vld [vmem:[%s925_s3 + $0x20] sm:$0xff] }
 0x142   :  { %438 = vmatpush.msra.mxu2 %v396_v23  ;;  %508 = vmatpush.msra.mxu3 %v396_v23  ;;  %v609_v23 = vld [vmem:[%s925_s3 + $0x28] sm:$0xff] }
 0x144   :  { %439 = vmatpush.msra.mxu2 %v395_v25  ;;  %509 = vmatpush.msra.mxu3 %v395_v25  ;;  %v611_v25 = vld [vmem:[%s925_s3 + $0x38] sm:$0xff] }
 0x146   :  { %440 = vmatpush.msra.mxu2 %v751_v19  ;;  %v404_v19 = vld [vmem:[%s925_s3 + $0x8] sm:$0xff] }
 0x148   :  { %441 = vmatpush.msra.mxu2 %v754_v21  ;;  %v405_v21 = vld [vmem:[%s925_s3 + $0x10] sm:$0xff] }
 0x14a   :  { %442 = vmatpush.msra.mxu2 %v757_v22  ;;  %v406_v22 = vld [vmem:[%s925_s3 + $0x18] sm:$0xff] }
 0x14c   :  { %443 = vmatpush.msra.mxu2 %v763_v24  ;;  %v76_v24 = vpop.permute.xlu2 %75 }
 0x14d   :  { %604 = vmatmul.msk.f32.vlgmr.msra.gmra.mxu2 %vm415_vm11, %v403_v26  ;;  %v111_v50 = vmul.f32 %v783_v41, %v76_v24  ;;  %v163_v26 = vpop.permute.xlu1 %162 }
 0x14e   :  { %v181_v37 = vmul.f32 %v786_v42, %v163_v26 }
 0x14f   :  { %v190_v60 = vadd.f32 %v177_v51, %v111_v50 }
 0x151   :  { %v269_v4 = vadd.f32 %v256_v61, %v190_v60 }
 0x154   :  { %v143_v29 = vpop.permute.xlu2 %142 }
 0x155   :  { %605 = vmatmul.msk.f32.gmra.mxu2 %vm415_vm11, %v404_v19  ;;  %v176_v45 = vmul.f32 %v786_v42, %v143_v29  ;;  %v96_v19 = vpop.permute.xlu0 %95 }
 0x157   :  { %v189_v56 = vadd.f32 %v176_v45, %v110_v47 }
 0x159   :  { %v268_v1 = vadd.f32 %v255_v58, %v189_v56 }
 0x15c   :  { %v66_v32 = vpop.permute.xlu2 %65 }
 0x15d   :  { %606 = vmatmul.msk.f32.gmra.mxu2 %vm415_vm11, %v405_v21  ;;  %v109_v46 = vmul.f32 %v783_v41, %v66_v32  ;;  %v86_v24 = vpop.permute.xlu0 %85 }
 0x15e   :  { %v113_v39 = vmul.f32 %v783_v41, %v86_v24 }
 0x15f   :  { %v188_v57 = vadd.f32 %v175_v48, %v109_v46 }
 0x161   :  { %v267_v0 = vadd.f32 %v254_v59, %v188_v57 }
 0x164   :  { %v61_v38 = vpop.permute.xlu2 %60 }
 0x165   :  { %607 = vmatmul.msk.f32.gmra.mxu2 %vm415_vm11, %v406_v22  ;;  %v108_v52 = vmul.f32 %v783_v41, %v61_v38  ;;  %v159_v22 = vpop.permute.xlu1 %158  ;;  %v115_v38 = vmul.f32 %v783_v41, %v96_v19 }
 0x166   :  { %v180_v35 = vmul.f32 %v786_v42, %v159_v22 }
 0x167   :  { %v187_v62 = vadd.f32 %v174_v53, %v108_v52  ;;  %v194_v50 = vadd.f32 %v181_v37, %v115_v38 }
 0x16c   :  { %v214_v54 = vpop.permute.xlu2 %213 }
 0x16d   :  { %v253_v63 = vmul.f32 %v789_v43, %v214_v54  ;;  %v155_v29 = vpop.permute.xlu1 %154 }
 0x16f   :  { %v266_v2 = vadd.f32 %v253_v63, %v187_v62 }
 0x174   :  { %v91_v21 = vpop.permute.xlu2 %90 }
 0x175   :  { %v114_v36 = vmul.f32 %v783_v41, %v91_v21 }
 0x177   :  { %v193_v48 = vadd.f32 %v180_v35, %v114_v36 }
 0x17c   :  { %v242_v27 = vpop.permute.xlu2 %241 }
 0x17d   :  { %v260_v51 = vmul.f32 %v789_v43, %v242_v27 }
 0x17f   :  { %v273_v60 = vadd.f32 %v260_v51, %v194_v50 }
 0x184   :  { %v238_v32 = vpop.permute.xlu2 %237 }
 0x185   :  { %v259_v49 = vmul.f32 %v789_v43, %v238_v32 }
 0x187   :  { %v272_v56 = vadd.f32 %v259_v49, %v193_v48 }
 0x18c   :  { %v234_v47 = vpop.permute.xlu2 %233 }
 0x19c   :  { %v81_v31 = vpop.permute.xlu0 %80 }
 0x19d   :  { %v112_v44 = vmul.f32 %v783_v41, %v81_v31 }
 0x1a5   :  { %v230_v46 = vpop.permute.xlu0 %229 }
 0x1a6   :  { %v257_v54 = vmul.f32 %v789_v43, %v230_v46 }
 0x1d0   :  { %v445_v34 = vpop.f32.mrf.mxu2 }
 0x1d1   :  { %v446_v10 = vadd.f32 %v445_v34, %v266_v2  ;;  %v151_v34 = vpop.permute.xlu1 %150 }
 0x1d2   :  { %v178_v45 = vmul.f32 %v786_v42, %v151_v34 }
 0x1d3   :  { %v461_v17 = vmul.f32 0.01, %v446_v10  ;;  %vm457_vm15 = vcmp.ge.f32.partialorder %v446_v10, 0.0 }
 0x1d4   :  { %v191_v53 = vadd.f32 %v178_v45, %v112_v44 }
 0x1d5   :  { %v876_v20 = vsel %vm457_vm15, %v446_v10, %v461_v17 }
 0x1d6   :  { %v270_v57 = vadd.f32 %v257_v54, %v191_v53 }
 0x1d8   :  { %v448_v40 = vpop.f32.mrf.mxu2 }
 0x1d9   :  { %v449_v8 = vadd.f32 %v448_v40, %v267_v0  ;;  %v179_v40 = vmul.f32 %v786_v42, %v155_v29 }
 0x1db   :  { %v462_v15 = vmul.f32 0.01, %v449_v8  ;;  %vm458_vm14 = vcmp.ge.f32.partialorder %v449_v8, 0.0  ;;  %v192_v52 = vadd.f32 %v179_v40, %v113_v39 }
 0x1dd   :  { %v870_v6 = vsel %vm458_vm14, %v449_v8, %v462_v15  ;;  %v167_v15 = vpop.permute.xlu2 %166 }
 0x1e0   :  { %v451_v55 = vpop.f32.mrf.mxu2 }
 0x1e1   :  { %v452_v3 = vadd.f32 %v451_v55, %v268_v1  ;;  %v258_v55 = vmul.f32 %v789_v43, %v234_v47 }
 0x1e3   :  { %v463_v13 = vmul.f32 0.01, %v452_v3  ;;  %vm459_vm13 = vcmp.ge.f32.partialorder %v452_v3, 0.0  ;;  %v271_v58 = vadd.f32 %v258_v55, %v192_v52 }
 0x1e5   :  { %v866_v16 = vsel %vm459_vm13, %v452_v3, %v463_v13  ;;  %v101_v13 = vpop.permute.xlu1 %100 }
 0x1e6   :  { %v116_v17 = vmul.f32 %v783_v41, %v101_v13 }
 0x1e8   :  { %v454_v5 = vpop.f32.mrf.mxu2 }
 0x1e9   :  { %v455_v9 = vadd.f32 %v454_v5, %v269_v4 }
 0x1eb   :  { %vm460_vm12 = vcmp.ge.f32.partialorder %v455_v9, 0.0  ;;  %v464_v11 = vmul.f32 0.01, %v455_v9 }
 0x1ed   :  { %v863_v14 = vsel %vm460_vm12, %v455_v9, %v464_v11  ;;  %v543_v11 = vld [vmem:[%s927_s5] sm:$0x1]  ;;  %s675_s5 = smov [#allocation3]  }
 0x1ee   :  { %510 = vmatpush.msra.mxu3 %v863_v14  ;;  %s584_s27 = sshll.u32 %s675_s5, 4  ;;  %s585_s27 = int_to_ptr.vmem [resolvable:$true] %s584_s27 }
 0x1f0   :  { %511 = vmatpush.msra.mxu3 %v866_v16 }
 0x1f2   :  { %512 = vmatpush.msra.mxu3 %v870_v6 }
 0x1f4   :  { %513 = vmatpush.msra.mxu3 %v876_v20 }
 0x1f5   :  { %612 = vmatmul.msk.f32.vlgmr.msra.gmra.mxu3 %vm415_vm11, %v608_v18  ;;  %v182_v18 = vmul.f32 %v786_v42, %v167_v15 }
 0x1fd   :  { %613 = vmatmul.msk.f32.gmra.mxu3 %vm415_vm11, %v609_v23  ;;  %v246_v23 = vpop.permute.xlu1 %245 }
 0x205   :  { %614 = vmatmul.msk.f32.gmra.mxu3 %vm415_vm11, %v610_v7 }
 0x20d   :  { %615 = vmatmul.msk.f32.gmra.mxu3 %vm415_vm11, %v611_v25 }
 0x278   :  { %v515_v28 = vpop.f32.mrf.mxu3 }
 0x279   :  { %v516_v0 = vadd.f32 %v515_v28, %v270_v57 }
 0x27b   :  { %v531_v8 = vmul.f32 0.01, %v516_v0  ;;  %vm527_vm3 = vcmp.ge.f32.partialorder %v516_v0, 0.0 }
 0x27d   :  { %v535_v10 = vsel %vm527_vm3, %v516_v0, %v531_v8 }
 0x280   :  { %v518_v33 = vpop.f32.mrf.mxu3 }
 0x281   :  { %v519_v62 = vadd.f32 %v518_v33, %v271_v58 }
 0x283   :  { %v532_v4 = vmul.f32 0.01, %v519_v62  ;;  %vm528_vm2 = vcmp.ge.f32.partialorder %v519_v62, 0.0 }
 0x285   :  { %v536_v9 = vsel %vm528_vm2, %v519_v62, %v532_v4 }
 0x288   :  { %v521_v12 = vpop.f32.mrf.mxu3 }
 0x289   :  { %v522_v59 = vadd.f32 %v521_v12, %v272_v56 }
 0x28b   :  { %v533_v2 = vmul.f32 0.01, %v522_v59  ;;  %vm529_vm1 = vcmp.ge.f32.partialorder %v522_v59, 0.0 }
 0x28d   :  { %v537_v5 = vsel %vm529_vm1, %v522_v59, %v533_v2 }
 0x290   :  { %v524_v61 = vpop.f32.mrf.mxu3 }
 0x291   :  { %v525_v63 = vadd.f32 %v524_v61, %v273_v60 }
 0x293   :  { %vm530_vm0 = vcmp.ge.f32.partialorder %v525_v63, 0.0  ;;  %v534_v1 = vmul.f32 0.01, %v525_v63 }
 0x295   :  { %v538_v3 = vsel %vm530_vm0, %v525_v63, %v534_v1 }
 0x296   :  { %563 = vmatpush.msrb.mxu0 %v538_v3 }
 0x298   :  { %564 = vmatpush.msrb.mxu0 %v537_v5 }
 0x29a   :  { %565 = vmatpush.msrb.mxu0 %v536_v9 }
 0x29c   :  { %566 = vmatpush.msrb.mxu0 %v535_v10 }
 0x29e   :  { %567 = vmatpush.msrb.mxu0 %v863_v14  ;;  %v195_v14 = vadd.f32 %v182_v18, %v116_v17 }
 0x2a0   :  { %568 = vmatpush.msrb.mxu0 %v866_v16  ;;  %v261_v16 = vmul.f32 %v789_v43, %v246_v23 }
 0x2a2   :  { %569 = vmatpush.msrb.mxu0 %v870_v6  ;;  %v274_v7 = vadd.f32 %v261_v16, %v195_v14 }
 0x2a4   :  { %570 = vmatpush.msrb.mxu0 %v876_v20 }
 0x2a5   :  { %616 = vmatmul.msk.f32.vlgmr.msrb.gmra.mxu0 %vm415_vm11, %v543_v11 }
 0x322   :  { %v572_v6 = vpop.f32.mrf.mxu0 }
 0x323   :  { %v573_v25 = vadd.f32 %v572_v6, %v274_v7 }
 0x325   :  { %644 = vtanh.f32 %v573_v25 }
 0x32b   :  { %v645_v26 = vpop.eup %644 }
 0x32c   :  { %v576_v20 = vadd.f32 1.0, %v645_v26 }
 0x32e   :  { %v577_v19 = vmul.f32 0.5, %v576_v20 }
 0x330   :  { %578 = vst [vmem:[#allocation3] sm:$0x1] %v577_v19 }
 0x331   :  { %589 = dma.vmem_to_hbm [thread:$0]  %s585_s27, 16, %s587_s29, [#allocation4]  }
 0x332   :  { %670 = dma.done.wait [#allocation4], 16  }
 0x333   :  { %671 = vsyncadd [#allocation4], 4294967280 }
 0x334   :  { %594 = vsyncpa [#allocation4], 1 }

</bundles_post_ra>
